<compile_context>
chip_gen: v7x
topology: tpu7x:2x2x1
jax: 0.10.0
libtpu: 0.0.40
codegen_flags: <defaults>
</compile_context>

<pallas_src>
import functools
import math

import jax
import jax.numpy as jnp
from jax.experimental import pallas as pl
from jax.experimental.pallas import tpu as pltpu


D_MODEL = 32
N_HEAD = 4
SEQ = 8
BATCH = 2
LN_EPS = 1e-5


def _layer_norm(x, gamma, beta):
    # x: (S, D) float32, gamma/beta: (1, D) float32
    mu = jnp.mean(x, axis=-1, keepdims=True)
    var = jnp.mean((x - mu) ** 2, axis=-1, keepdims=True)
    return (x - mu) * jax.lax.rsqrt(var + LN_EPS) * gamma + beta


def _block_kernel(x_ref, wq_ref, wk_ref, wv_ref, wo_ref, wfc_ref, wproj_ref,
                  vecs_ref, o_ref, *, d_model, n_head):
    D = d_model
    H = n_head
    hd = D // H

    x = x_ref[...].astype(jnp.float32)                 # (S, D), one batch element
    S = x.shape[0]

    # Packed small vectors: (10, 4D) f32.
    vecs = vecs_ref[...]
    ln1_g = vecs[0:1, :D]
    ln1_b = vecs[1:2, :D]
    ln2_g = vecs[2:3, :D]
    ln2_b = vecs[3:4, :D]
    b_q = vecs[4:5, :D]                                 # already scaled by 1/sqrt(hd)
    b_k = vecs[5:6, :D]
    b_v = vecs[6:7, :D]
    b_out = vecs[7:8, :D]
    b_proj = vecs[8:9, :D]
    b_fc = vecs[9:10, :]                                # (1, 4D)

    # ---- attention branch ----------------------------------------------------
    h = _layer_norm(x, ln1_g, ln1_b)                    # (S, D) f32
    h_bf = h.astype(jnp.bfloat16)                       # MXU feed in bf16

    # Q/K/V projections; 1/sqrt(hd) scale is folded into w_q / b_q host-side.
    q = jnp.dot(h_bf, wq_ref[...], preferred_element_type=jnp.float32) + b_q
    k = jnp.dot(h_bf, wk_ref[...], preferred_element_type=jnp.float32) + b_k
    v = jnp.dot(h_bf, wv_ref[...], preferred_element_type=jnp.float32) + b_v

    # Head-batched attention: (S, H, hd) with H as the dot_general batch dim.
    q3 = q.reshape(S, H, hd).astype(jnp.bfloat16)
    k3 = k.reshape(S, H, hd).astype(jnp.bfloat16)
    v3 = v.reshape(S, H, hd).astype(jnp.bfloat16)

    s = jnp.einsum('qhd,khd->hqk', q3, k3,
                   preferred_element_type=jnp.float32)  # (H, S, S) f32
    s = s - jnp.max(s, axis=-1, keepdims=True)
    p = jnp.exp(s)
    p = p * pl.reciprocal(jnp.sum(p, axis=-1, keepdims=True), approx=True)

    o = jnp.einsum('hqk,khd->qhd', p.astype(jnp.bfloat16), v3,
                   preferred_element_type=jnp.float32)  # (S, H, hd) f32
    o = o.reshape(S, D)

    # Single output projection over the full D contraction (no per-head matmuls).
    attn = jnp.dot(o.astype(jnp.bfloat16), wo_ref[...],
                   preferred_element_type=jnp.float32) + b_out

    x1 = x + attn                                       # residual 1 (f32)

    # ---- MLP branch ----------------------------------------------------------
    h2 = _layer_norm(x1, ln2_g, ln2_b)                  # (S, D) f32
    fc = jnp.dot(h2.astype(jnp.bfloat16), wfc_ref[...],
                 preferred_element_type=jnp.float32) + b_fc      # (S, 4D) f32
    fc = fc * jax.nn.sigmoid(1.702 * fc)                # QuickGELU in f32
    mlp = jnp.dot(fc.astype(jnp.bfloat16), wproj_ref[...],
                  preferred_element_type=jnp.float32) + b_proj   # (S, D) f32

    o_ref[...] = (x1 + mlp).astype(o_ref.dtype)         # residual 2


def prepare_params(p, d_model=D_MODEL, n_head=N_HEAD):
    """One-time host-side prep: split w_qkv into per-projection weights, fold
    the 1/sqrt(hd) scale into w_q/b_q, transpose to (in, out) layout, cast the
    matmul weights to bf16, and pack the 10 small vectors into one buffer."""
    D = d_model
    hd = D // n_head
    scale = 1.0 / math.sqrt(hd)
    bf = jnp.bfloat16

    w_qkv = p["w_qkv"].astype(jnp.float32)              # (3D, D) PyTorch (out, in)
    b_qkv = p["b_qkv"].astype(jnp.float32)
    w_q = (w_qkv[:D] * scale).T                         # (D, D) (in, out), scale folded
    w_k = w_qkv[D:2 * D].T
    w_v = w_qkv[2 * D:].T
    b_q = b_qkv[:D] * scale
    b_k = b_qkv[D:2 * D]
    b_v = b_qkv[2 * D:]

    def pad_row(vec):
        return jnp.pad(vec.astype(jnp.float32), (0, 4 * D - vec.shape[0]))

    vecs = jnp.stack([
        pad_row(p["ln1_g"]), pad_row(p["ln1_b"]),
        pad_row(p["ln2_g"]), pad_row(p["ln2_b"]),
        pad_row(b_q), pad_row(b_k), pad_row(b_v),
        pad_row(p["b_out"]), pad_row(p["b_proj"]),
        pad_row(p["b_fc"]),
    ], axis=0)                                          # (10, 4D) f32

    return {
        "w_q": w_q.astype(bf), "w_k": w_k.astype(bf), "w_v": w_v.astype(bf),
        "w_out": p["w_out"].T.astype(bf),               # (D, D)
        "w_fc": p["w_fc"].T.astype(bf),                 # (D, 4D)
        "w_proj": p["w_proj"].T.astype(bf),             # (4D, D)
        "vecs": vecs,
    }


def residual_attention_block(x_sbd, prep, *, n_head=N_HEAD):
    """x_sbd: (S, B, D) -- PyTorch nn.MultiheadAttention layout (batch_first=False)."""
    S, B, D = x_sbd.shape
    x_bsd = jnp.transpose(x_sbd, (1, 0, 2))             # (B, S, D): per-batch contiguous

    kernel = functools.partial(_block_kernel, d_model=D, n_head=n_head)

    weights = (prep["w_q"], prep["w_k"], prep["w_v"], prep["w_out"],
               prep["w_fc"], prep["w_proj"], prep["vecs"])

    def const_spec(arr):
        # Constant index_map -> weight DMA'd once, stays resident across steps.
        return pl.BlockSpec(arr.shape, lambda b: (0, 0))

    act_spec = pl.BlockSpec((pl.Squeezed(), S, D), lambda b: (b, 0, 0))

    out_bsd = pl.pallas_call(
        kernel,
        out_shape=jax.ShapeDtypeStruct((B, S, D), x_sbd.dtype),
        grid_spec=pltpu.PrefetchScalarGridSpec(
            num_scalar_prefetch=0,
            grid=(B,),                                  # per-batch attention, no mask
            in_specs=[act_spec] + [const_spec(a) for a in weights],
            out_specs=pl.BlockSpec((pl.Squeezed(), S, D), lambda b: (b, 0, 0)),
        ),
        compiler_params=pltpu.CompilerParams(
            # "parallel" lets the batch axis shard across TensorCores on v7x;
            # harmless (single-TC loop) on v5e/v6e.
            dimension_semantics=("parallel",)),
    )(x_bsd, *weights)

    return jnp.transpose(out_bsd, (1, 0, 2))            # back to (S, B, D)


# ------------------------------ pure-JAX reference ----------------------------
def reference(x_sbd, p, *, n_head=N_HEAD):
    S, B, D = x_sbd.shape
    hd = D // n_head
    x = jnp.transpose(x_sbd, (1, 0, 2)).astype(jnp.float32)       # (B, S, D)

    def ln(v, g, b):
        mu = jnp.mean(v, -1, keepdims=True)
        var = jnp.mean((v - mu) ** 2, -1, keepdims=True)
        return (v - mu) / jnp.sqrt(var + LN_EPS) * g + b

    h = ln(x, p["ln1_g"], p["ln1_b"])
    qkv = h @ p["w_qkv"].T + p["b_qkv"]
    q, k, v = qkv[..., :D], qkv[..., D:2 * D], qkv[..., 2 * D:]
    q = q.reshape(B, S, n_head, hd).transpose(0, 2, 1, 3) / (hd ** 0.5)
    k = k.reshape(B, S, n_head, hd).transpose(0, 2, 1, 3)
    v = v.reshape(B, S, n_head, hd).transpose(0, 2, 1, 3)
    a = jax.nn.softmax(q @ jnp.swapaxes(k, -1, -2), axis=-1)
    o = (a @ v).transpose(0, 2, 1, 3).reshape(B, S, D)
    o = o @ p["w_out"].T + p["b_out"]
    x1 = x + o
    h2 = ln(x1, p["ln2_g"], p["ln2_b"])
    fc = h2 @ p["w_fc"].T + p["b_fc"]
    fc = fc * jax.nn.sigmoid(1.702 * fc)
    out = x1 + (fc @ p["w_proj"].T + p["b_proj"])
    return jnp.transpose(out, (1, 0, 2))


def make_params(key, d_model=D_MODEL):
    """Parameters in PyTorch convention: weights (out_features, in_features)."""
    ks = jax.random.split(key, 12)
    s = 0.05
    return {
        "ln1_g": 1.0 + 0.1 * jax.random.normal(ks[8], (d_model,), jnp.float32),
        "ln1_b": 0.1 * jax.random.normal(ks[9], (d_model,), jnp.float32),
        "w_qkv": s * jax.random.normal(ks[0], (3 * d_model, d_model), jnp.float32),
        "b_qkv": s * jax.random.normal(ks[1], (3 * d_model,), jnp.float32),
        "w_out": s * jax.random.normal(ks[2], (d_model, d_model), jnp.float32),
        "b_out": s * jax.random.normal(ks[3], (d_model,), jnp.float32),
        "ln2_g": 1.0 + 0.1 * jax.random.normal(ks[10], (d_model,), jnp.float32),
        "ln2_b": 0.1 * jax.random.normal(ks[11], (d_model,), jnp.float32),
        "w_fc": s * jax.random.normal(ks[4], (4 * d_model, d_model), jnp.float32),
        "b_fc": s * jax.random.normal(ks[5], (4 * d_model,), jnp.float32),
        "w_proj": s * jax.random.normal(ks[6], (d_model, 4 * d_model), jnp.float32),
        "b_proj": s * jax.random.normal(ks[7], (d_model,), jnp.float32),
    }


if __name__ == "__main__":
    key = jax.random.PRNGKey(0)
    k_x, k_p = jax.random.split(key)
    params = make_params(k_p)
    prep = prepare_params(params)        # one-time host-side split/transpose/pack/bf16

    # (seq, batch, d_model) -- PyTorch MultiheadAttention default layout
    x = jax.random.normal(k_x, (SEQ, BATCH, D_MODEL), jnp.float32)

    out = jax.block_until_ready(residual_attention_block(x, prep))
    ref = reference(x, params)

    assert out.shape == (SEQ, BATCH, D_MODEL)
    err = float(jnp.max(jnp.abs(out - ref)))
    # Tolerance accounts for bf16 MXU inputs + approx reciprocal vs. the pure-f32
    # reference (observed error is a few 1e-3; LN/softmax/GELU/residuals are f32).
    assert err < 2e-2, err
    print("KERNEL_OK")
</pallas_src>

<mosaic_0001>
module attributes {stable_mosaic.version = 11 : i64} {
  func.func @_block_kernel(%arg0: i32, %arg1: memref<1x8x32xf32, #tpu.memory_space<vmem>>, %arg2: memref<32x32xbf16, #tpu.memory_space<vmem>>, %arg3: memref<32x32xbf16, #tpu.memory_space<vmem>>, %arg4: memref<32x32xbf16, #tpu.memory_space<vmem>>, %arg5: memref<32x32xbf16, #tpu.memory_space<vmem>>, %arg6: memref<32x128xbf16, #tpu.memory_space<vmem>>, %arg7: memref<128x32xbf16, #tpu.memory_space<vmem>>, %arg8: memref<10x128xf32, #tpu.memory_space<vmem>>, %arg9: memref<1x8x32xf32, #tpu.memory_space<vmem>>) attributes {dimension_semantics = [#tpu.dimension_semantics<parallel>], iteration_bounds = array<i64: 2>, scalar_prefetch = 0 : i64, scratch_operands = 0 : i64, tpu.core_type = #tpu.core_type<tc>, window_params = [{transform_indices = @transform_0, window_bounds = array<i64: 1, 8, 32>}, {pipeline_mode = #tpu.pipeline_mode<synchronous>, transform_indices = @transform_1, window_bounds = array<i64: 32, 32>}, {pipeline_mode = #tpu.pipeline_mode<synchronous>, transform_indices = @transform_2, window_bounds = array<i64: 32, 32>}, {pipeline_mode = #tpu.pipeline_mode<synchronous>, transform_indices = @transform_3, window_bounds = array<i64: 32, 32>}, {pipeline_mode = #tpu.pipeline_mode<synchronous>, transform_indices = @transform_4, window_bounds = array<i64: 32, 32>}, {pipeline_mode = #tpu.pipeline_mode<synchronous>, transform_indices = @transform_5, window_bounds = array<i64: 32, 128>}, {pipeline_mode = #tpu.pipeline_mode<synchronous>, transform_indices = @transform_6, window_bounds = array<i64: 128, 32>}, {pipeline_mode = #tpu.pipeline_mode<synchronous>, transform_indices = @transform_7, window_bounds = array<i64: 10, 128>}, {transform_indices = @transform_8, window_bounds = array<i64: 1, 8, 32>}]} {
    %c0 = arith.constant 0 : index
    %c0_0 = arith.constant 0 : index
    %c0_1 = arith.constant 0 : index
    %0 = vector.load %arg1[%c0, %c0_0, %c0_1] : memref<1x8x32xf32, #tpu.memory_space<vmem>>, vector<1x8x32xf32>
    %1 = vector.shape_cast %0 : vector<1x8x32xf32> to vector<8x32xf32>
    %c0_2 = arith.constant 0 : index
    %c0_3 = arith.constant 0 : index
    %2 = vector.load %arg8[%c0_2, %c0_3] : memref<10x128xf32, #tpu.memory_space<vmem>>, vector<10x128xf32>
    %3 = vector.extract_strided_slice %2 {offsets = [0, 0], sizes = [1, 32], strides = [1, 1]} : vector<10x128xf32> to vector<1x32xf32>
    %4 = vector.extract_strided_slice %2 {offsets = [1, 0], sizes = [1, 32], strides = [1, 1]} : vector<10x128xf32> to vector<1x32xf32>
    %5 = vector.extract_strided_slice %2 {offsets = [2, 0], sizes = [1, 32], strides = [1, 1]} : vector<10x128xf32> to vector<1x32xf32>
    %6 = vector.extract_strided_slice %2 {offsets = [3, 0], sizes = [1, 32], strides = [1, 1]} : vector<10x128xf32> to vector<1x32xf32>
    %7 = vector.extract_strided_slice %2 {offsets = [4, 0], sizes = [1, 32], strides = [1, 1]} : vector<10x128xf32> to vector<1x32xf32>
    %8 = vector.extract_strided_slice %2 {offsets = [5, 0], sizes = [1, 32], strides = [1, 1]} : vector<10x128xf32> to vector<1x32xf32>
    %9 = vector.extract_strided_slice %2 {offsets = [6, 0], sizes = [1, 32], strides = [1, 1]} : vector<10x128xf32> to vector<1x32xf32>
    %10 = vector.extract_strided_slice %2 {offsets = [7, 0], sizes = [1, 32], strides = [1, 1]} : vector<10x128xf32> to vector<1x32xf32>
    %11 = vector.extract_strided_slice %2 {offsets = [8, 0], sizes = [1, 32], strides = [1, 1]} : vector<10x128xf32> to vector<1x32xf32>
    %12 = vector.extract_strided_slice %2 {offsets = [9, 0], sizes = [1, 128], strides = [1, 1]} : vector<10x128xf32> to vector<1x128xf32>
    %cst = arith.constant dense<0.000000e+00> : vector<8xf32>
    %13 = vector.multi_reduction <add>, %1, %cst [1] : vector<8x32xf32> to vector<8xf32>
    %14 = vector.shape_cast %13 : vector<8xf32> to vector<8x1xf32>
    %cst_4 = arith.constant 3.200000e+01 : f32
    %15 = vector.broadcast %cst_4 : f32 to vector<8x1xf32>
    %16 = arith.divf %14, %15 : vector<8x1xf32>
    %17 = vector.broadcast %16 : vector<8x1xf32> to vector<8x32xf32>
    %18 = arith.subf %1, %17 : vector<8x32xf32>
    %19 = arith.mulf %18, %18 : vector<8x32xf32>
    %cst_5 = arith.constant dense<0.000000e+00> : vector<8xf32>
    %20 = vector.multi_reduction <add>, %19, %cst_5 [1] : vector<8x32xf32> to vector<8xf32>
    %21 = vector.shape_cast %20 : vector<8xf32> to vector<8x1xf32>
    %cst_6 = arith.constant 3.200000e+01 : f32
    %22 = vector.broadcast %cst_6 : f32 to vector<8x1xf32>
    %23 = arith.divf %21, %22 : vector<8x1xf32>
    %24 = vector.broadcast %16 : vector<8x1xf32> to vector<8x32xf32>
    %25 = arith.subf %1, %24 : vector<8x32xf32>
    %cst_7 = arith.constant 9.99999974E-6 : f32
    %26 = vector.broadcast %cst_7 : f32 to vector<8x1xf32>
    %27 = arith.addf %23, %26 : vector<8x1xf32>
    %28 = math.rsqrt %27 : vector<8x1xf32>
    %29 = vector.broadcast %28 : vector<8x1xf32> to vector<8x32xf32>
    %30 = arith.mulf %25, %29 : vector<8x32xf32>
    %31 = vector.broadcast %3 : vector<1x32xf32> to vector<8x32xf32>
    %32 = arith.mulf %30, %31 : vector<8x32xf32>
    %33 = vector.broadcast %4 : vector<1x32xf32> to vector<8x32xf32>
    %34 = arith.addf %32, %33 : vector<8x32xf32>
    %35 = arith.truncf %34 : vector<8x32xf32> to vector<8x32xbf16>
    %c0_8 = arith.constant 0 : index
    %c0_9 = arith.constant 0 : index
    %36 = vector.load %arg2[%c0_8, %c0_9] : memref<32x32xbf16, #tpu.memory_space<vmem>>, vector<32x32xbf16>
    %cst_10 = arith.constant dense<0.000000e+00> : vector<8x32xf32>
    %37 = tpu.matmul %35, %36, %cst_10 {dimension_numbers = #tpu.dot_dimension_numbers<[1], [0], [0], [1], [0, 0, 1, 1], [], []>} : vector<8x32xbf16>, vector<32x32xbf16>, vector<8x32xf32> -> vector<8x32xf32>
    %38 = vector.broadcast %7 : vector<1x32xf32> to vector<8x32xf32>
    %39 = arith.addf %37, %38 : vector<8x32xf32>
    %c0_11 = arith.constant 0 : index
    %c0_12 = arith.constant 0 : index
    %40 = vector.load %arg3[%c0_11, %c0_12] : memref<32x32xbf16, #tpu.memory_space<vmem>>, vector<32x32xbf16>
    %cst_13 = arith.constant dense<0.000000e+00> : vector<8x32xf32>
    %41 = tpu.matmul %35, %40, %cst_13 {dimension_numbers = #tpu.dot_dimension_numbers<[1], [0], [0], [1], [0, 0, 1, 1], [], []>} : vector<8x32xbf16>, vector<32x32xbf16>, vector<8x32xf32> -> vector<8x32xf32>
    %42 = vector.broadcast %8 : vector<1x32xf32> to vector<8x32xf32>
    %43 = arith.addf %41, %42 : vector<8x32xf32>
    %c0_14 = arith.constant 0 : index
    %c0_15 = arith.constant 0 : index
    %44 = vector.load %arg4[%c0_14, %c0_15] : memref<32x32xbf16, #tpu.memory_space<vmem>>, vector<32x32xbf16>
    %cst_16 = arith.constant dense<0.000000e+00> : vector<8x32xf32>
    %45 = tpu.matmul %35, %44, %cst_16 {dimension_numbers = #tpu.dot_dimension_numbers<[1], [0], [0], [1], [0, 0, 1, 1], [], []>} : vector<8x32xbf16>, vector<32x32xbf16>, vector<8x32xf32> -> vector<8x32xf32>
    %46 = vector.broadcast %9 : vector<1x32xf32> to vector<8x32xf32>
    %47 = arith.addf %45, %46 : vector<8x32xf32>
    %48 = vector.shape_cast %39 : vector<8x32xf32> to vector<8x4x8xf32>
    %49 = arith.truncf %48 : vector<8x4x8xf32> to vector<8x4x8xbf16>
    %50 = vector.shape_cast %43 : vector<8x32xf32> to vector<8x4x8xf32>
    %51 = arith.truncf %50 : vector<8x4x8xf32> to vector<8x4x8xbf16>
    %52 = vector.shape_cast %47 : vector<8x32xf32> to vector<8x4x8xf32>
    %53 = arith.truncf %52 : vector<8x4x8xf32> to vector<8x4x8xbf16>
    "tpu.trace_start"() <{level = 10 : i32, message = "qhd,khd->hqk"}> : () -> ()
    %cst_17 = arith.constant dense<0.000000e+00> : vector<4x8x8xf32>
    %54 = tpu.matmul %49, %51, %cst_17 {dimension_numbers = #tpu.dot_dimension_numbers<[2], [2], [0], [0], [0, 1, 0, 0, 1, 0], [1], [1]>} : vector<8x4x8xbf16>, vector<8x4x8xbf16>, vector<4x8x8xf32> -> vector<4x8x8xf32>
    "tpu.trace_stop"() : () -> ()
    %cst_18 = arith.constant dense<0xFF800000> : vector<4x8xf32>
    %55 = vector.multi_reduction <maximumf>, %54, %cst_18 [2] : vector<4x8x8xf32> to vector<4x8xf32>
    %56 = vector.shape_cast %55 : vector<4x8xf32> to vector<4x8x1xf32>
    %57 = vector.broadcast %56 : vector<4x8x1xf32> to vector<4x8x8xf32>
    %58 = arith.subf %54, %57 : vector<4x8x8xf32>
    %59 = math.exp %58 : vector<4x8x8xf32>
    %cst_19 = arith.constant dense<0.000000e+00> : vector<4x8xf32>
    %60 = vector.multi_reduction <add>, %59, %cst_19 [2] : vector<4x8x8xf32> to vector<4x8xf32>
    %61 = vector.shape_cast %60 : vector<4x8xf32> to vector<4x8x1xf32>
    %62 = tpu.reciprocal %61 {approx = true} : vector<4x8x1xf32> -> vector<4x8x1xf32>
    %63 = vector.broadcast %62 : vector<4x8x1xf32> to vector<4x8x8xf32>
    %64 = arith.mulf %59, %63 : vector<4x8x8xf32>
    %65 = arith.truncf %64 : vector<4x8x8xf32> to vector<4x8x8xbf16>
    "tpu.trace_start"() <{level = 10 : i32, message = "hqk,khd->qhd"}> : () -> ()
    %cst_20 = arith.constant dense<0.000000e+00> : vector<4x8x8xf32>
    %66 = tpu.matmul %53, %65, %cst_20 {dimension_numbers = #tpu.dot_dimension_numbers<[0], [2], [2], [1], [0, 1, 0, 2, 1, 1], [1], [0]>} : vector<8x4x8xbf16>, vector<4x8x8xbf16>, vector<4x8x8xf32> -> vector<4x8x8xf32>
    %67 = tpu.transpose %66, [2, 0, 1] : vector<4x8x8xf32> -> vector<8x4x8xf32>
    "tpu.trace_stop"() : () -> ()
    %68 = vector.shape_cast %67 : vector<8x4x8xf32> to vector<8x32xf32>
    %69 = arith.truncf %68 : vector<8x32xf32> to vector<8x32xbf16>
    %c0_21 = arith.constant 0 : index
    %c0_22 = arith.constant 0 : index
    %70 = vector.load %arg5[%c0_21, %c0_22] : memref<32x32xbf16, #tpu.memory_space<vmem>>, vector<32x32xbf16>
    %cst_23 = arith.constant dense<0.000000e+00> : vector<8x32xf32>
    %71 = tpu.matmul %69, %70, %cst_23 {dimension_numbers = #tpu.dot_dimension_numbers<[1], [0], [0], [1], [0, 0, 1, 1], [], []>} : vector<8x32xbf16>, vector<32x32xbf16>, vector<8x32xf32> -> vector<8x32xf32>
    %72 = vector.broadcast %10 : vector<1x32xf32> to vector<8x32xf32>
    %73 = arith.addf %71, %72 : vector<8x32xf32>
    %74 = arith.addf %1, %73 : vector<8x32xf32>
    %cst_24 = arith.constant dense<0.000000e+00> : vector<8xf32>
    %75 = vector.multi_reduction <add>, %74, %cst_24 [1] : vector<8x32xf32> to vector<8xf32>
    %76 = vector.shape_cast %75 : vector<8xf32> to vector<8x1xf32>
    %cst_25 = arith.constant 3.200000e+01 : f32
    %77 = vector.broadcast %cst_25 : f32 to vector<8x1xf32>
    %78 = arith.divf %76, %77 : vector<8x1xf32>
    %79 = vector.broadcast %78 : vector<8x1xf32> to vector<8x32xf32>
    %80 = arith.subf %74, %79 : vector<8x32xf32>
    %81 = arith.mulf %80, %80 : vector<8x32xf32>
    %cst_26 = arith.constant dense<0.000000e+00> : vector<8xf32>
    %82 = vector.multi_reduction <add>, %81, %cst_26 [1] : vector<8x32xf32> to vector<8xf32>
    %83 = vector.shape_cast %82 : vector<8xf32> to vector<8x1xf32>
    %cst_27 = arith.constant 3.200000e+01 : f32
    %84 = vector.broadcast %cst_27 : f32 to vector<8x1xf32>
    %85 = arith.divf %83, %84 : vector<8x1xf32>
    %86 = vector.broadcast %78 : vector<8x1xf32> to vector<8x32xf32>
    %87 = arith.subf %74, %86 : vector<8x32xf32>
    %cst_28 = arith.constant 9.99999974E-6 : f32
    %88 = vector.broadcast %cst_28 : f32 to vector<8x1xf32>
    %89 = arith.addf %85, %88 : vector<8x1xf32>
    %90 = math.rsqrt %89 : vector<8x1xf32>
    %91 = vector.broadcast %90 : vector<8x1xf32> to vector<8x32xf32>
    %92 = arith.mulf %87, %91 : vector<8x32xf32>
    %93 = vector.broadcast %5 : vector<1x32xf32> to vector<8x32xf32>
    %94 = arith.mulf %92, %93 : vector<8x32xf32>
    %95 = vector.broadcast %6 : vector<1x32xf32> to vector<8x32xf32>
    %96 = arith.addf %94, %95 : vector<8x32xf32>
    %97 = arith.truncf %96 : vector<8x32xf32> to vector<8x32xbf16>
    %c0_29 = arith.constant 0 : index
    %c0_30 = arith.constant 0 : index
    %98 = vector.load %arg6[%c0_29, %c0_30] : memref<32x128xbf16, #tpu.memory_space<vmem>>, vector<32x128xbf16>
    %cst_31 = arith.constant dense<0.000000e+00> : vector<8x128xf32>
    %99 = tpu.matmul %97, %98, %cst_31 {dimension_numbers = #tpu.dot_dimension_numbers<[1], [0], [0], [1], [0, 0, 1, 1], [], []>} : vector<8x32xbf16>, vector<32x128xbf16>, vector<8x128xf32> -> vector<8x128xf32>
    %100 = vector.broadcast %12 : vector<1x128xf32> to vector<8x128xf32>
    %101 = arith.addf %99, %100 : vector<8x128xf32>
    %cst_32 = arith.constant 1.702000e+00 : f32
    %102 = vector.broadcast %cst_32 : f32 to vector<8x128xf32>
    %103 = arith.mulf %102, %101 : vector<8x128xf32>
    %104 = arith.negf %103 : vector<8x128xf32>
    %105 = math.exp %104 : vector<8x128xf32>
    %cst_33 = arith.constant 1.000000e+00 : f32
    %106 = vector.broadcast %cst_33 : f32 to vector<8x128xf32>
    %107 = arith.addf %106, %105 : vector<8x128xf32>
    %108 = arith.divf %106, %107 : vector<8x128xf32>
    %109 = arith.mulf %101, %108 : vector<8x128xf32>
    %110 = arith.truncf %109 : vector<8x128xf32> to vector<8x128xbf16>
    %c0_34 = arith.constant 0 : index
    %c0_35 = arith.constant 0 : index
    %111 = vector.load %arg7[%c0_34, %c0_35] : memref<128x32xbf16, #tpu.memory_space<vmem>>, vector<128x32xbf16>
    %cst_36 = arith.constant dense<0.000000e+00> : vector<8x32xf32>
    %112 = tpu.matmul %110, %111, %cst_36 {dimension_numbers = #tpu.dot_dimension_numbers<[1], [0], [0], [1], [0, 0, 1, 1], [], []>} : vector<8x128xbf16>, vector<128x32xbf16>, vector<8x32xf32> -> vector<8x32xf32>
    %113 = vector.broadcast %11 : vector<1x32xf32> to vector<8x32xf32>
    %114 = arith.addf %112, %113 : vector<8x32xf32>
    %115 = arith.addf %74, %114 : vector<8x32xf32>
    %c0_37 = arith.constant 0 : index
    %c0_38 = arith.constant 0 : index
    %c0_39 = arith.constant 0 : index
    %116 = vector.load %arg9[%c0_37, %c0_38, %c0_39] : memref<1x8x32xf32, #tpu.memory_space<vmem>>, vector<1x8x32xf32>
    %117 = vector.shape_cast %116 : vector<1x8x32xf32> to vector<8x32xf32>
    %118 = vector.shape_cast %115 : vector<8x32xf32> to vector<1x8x32xf32>
    tpu.vector_store %arg9[%c0_37, %c0_38, %c0_39], %118 {strides = array<i32>} : memref<1x8x32xf32, #tpu.memory_space<vmem>>, vector<1x8x32xf32>,
    return
  }
  func.func @transform_0(%arg0: i32) -> (i32, i32, i32) {
    %c0_i32 = arith.constant 0 : i32
    %c0_i32_0 = arith.constant 0 : i32
    %c0_i32_1 = arith.constant 0 : i32
    return %arg0, %c0_i32, %c0_i32_0 : i32, i32, i32
  }
  func.func @transform_1(%arg0: i32) -> (i32, i32) {
    %c0_i32 = arith.constant 0 : i32
    %c0_i32_0 = arith.constant 0 : i32
    %c0_i32_1 = arith.constant 0 : i32
    return %c0_i32, %c0_i32_0 : i32, i32
  }
  func.func @transform_2(%arg0: i32) -> (i32, i32) {
    %c0_i32 = arith.constant 0 : i32
    %c0_i32_0 = arith.constant 0 : i32
    %c0_i32_1 = arith.constant 0 : i32
    return %c0_i32, %c0_i32_0 : i32, i32
  }
  func.func @transform_3(%arg0: i32) -> (i32, i32) {
    %c0_i32 = arith.constant 0 : i32
    %c0_i32_0 = arith.constant 0 : i32
    %c0_i32_1 = arith.constant 0 : i32
    return %c0_i32, %c0_i32_0 : i32, i32
  }
  func.func @transform_4(%arg0: i32) -> (i32, i32) {
    %c0_i32 = arith.constant 0 : i32
    %c0_i32_0 = arith.constant 0 : i32
    %c0_i32_1 = arith.constant 0 : i32
    return %c0_i32, %c0_i32_0 : i32, i32
  }
  func.func @transform_5(%arg0: i32) -> (i32, i32) {
    %c0_i32 = arith.constant 0 : i32
    %c0_i32_0 = arith.constant 0 : i32
    %c0_i32_1 = arith.constant 0 : i32
    return %c0_i32, %c0_i32_0 : i32, i32
  }
  func.func @transform_6(%arg0: i32) -> (i32, i32) {
    %c0_i32 = arith.constant 0 : i32
    %c0_i32_0 = arith.constant 0 : i32
    %c0_i32_1 = arith.constant 0 : i32
    return %c0_i32, %c0_i32_0 : i32, i32
  }
  func.func @transform_7(%arg0: i32) -> (i32, i32) {
    %c0_i32 = arith.constant 0 : i32
    %c0_i32_0 = arith.constant 0 : i32
    %c0_i32_1 = arith.constant 0 : i32
    return %c0_i32, %c0_i32_0 : i32, i32
  }
  func.func @transform_8(%arg0: i32) -> (i32, i32, i32) {
    %c0_i32 = arith.constant 0 : i32
    %c0_i32_0 = arith.constant 0 : i32
    %c0_i32_1 = arith.constant 0 : i32
    return %arg0, %c0_i32, %c0_i32_0 : i32, i32, i32
  }
}

</mosaic_0001>

<bundles_post_ra>
// kernel: tpu_custom_call.1
= control target key start
LH: loop header
LB: loop body
LE: loop exit
PB: predicated region body
PF: predicated region fallthrough
CT: control target
= control target key end

     0   :  { %13 = vsyncpa [#allocation3], 0  ;;  %s3775_s0 = inlined_call_operand.vmem [shape: f32[2,8,32], index: 0, kind: input, shape index: {}]   ;;  %s3776_s1 = inlined_call_operand.vmem [shape: bf16[32,32], index: 1, kind: input, shape index: {}]   ;;  %s3777_s2 = inlined_call_operand.vmem [shape: bf16[32,32], index: 2, kind: input, shape index: {}]   ;;  %s3778_s3 = inlined_call_operand.vmem [shape: bf16[32,32], index: 3, kind: input, shape index: {}]   ;;  %s3779_s4 = inlined_call_operand.vmem [shape: bf16[32,32], index: 4, kind: input, shape index: {}]   ;;  %s3780_s5 = inlined_call_operand.hbm [shape: bf16[32,128], index: 5, kind: input, shape index: {}]   ;;  %s3781_s6 = inlined_call_operand.vmem [shape: bf16[128,32], index: 6, kind: input, shape index: {}]   ;;  %s3782_s7 = inlined_call_operand.hbm [shape: f32[10,128], index: 7, kind: input, shape index: {}]   ;;  %s3783_s8 = inlined_call_operand.hbm [shape: f32[2,8,32], index: 8, kind: output, shape index: {}]  }
   0x1   :  { %14 = vsyncpa [#allocation6], 0 }
   0x2   :  { %15 = vsyncpa [#allocation4], 0 }
   0x3   :  { %17 = vsyncpa [#allocation4 + $0x1], 0  ;;  %s3275_s27 = smov 0   ;;  %s3277_s28 = smov 0  }
   0x4   :  { %s3279_s29 = smov 0   ;;  %s3281_s30 = smov 0  }
   0x5 LB: > { %3788 = sst [smem:[#allocation11_spill]] %s3206_s29  ;;  %s3296_s9 = sadd.s32 4294967295, %s3210_s30   ;;  %s3210_s30 = sphi %s3281_s30, %s3805_s30   ;;  %s3206_s29 = sphi %s3279_s29, %s3802_s29   ;;  %s3202_s28 = sphi %s3277_s28, %s3804_s28   ;;  %s3198_s27 = sphi %s3275_s27, %s3803_s27  }
   0x6   : > { %s2765_s10 = sadd.s32 4294967294, %s3210_s30   ;;  %s3300_s11 = sadd.s32 1, %s3210_s30  }
   0x7   : > { %s203_s12 = sadd.s32 1, %s3206_s29  ;;  %s200_s13 = ssub.s32 %s3210_s30, %s3300_s11 }
   0x8   : > { %p213_p0 = scmp.ne.s32.totalorder %s3206_s29, %s3202_s28  ;;  %p201_p1 = scmp.eq.s32.totalorder %s200_s13, 0 }
   0x9   : > { %p214_p2 = scmp.eq.s32.totalorder %s3296_s9, 1  ;;  %p219_p3 = scmp.ne.s32.totalorder %s3202_s28, %s3198_s27 }
   0xa   : > { %p220_p4 = scmp.eq.s32.totalorder %s2765_s10, 1  ;;  %p2766_p7 = scmp.ge.s32.totalorder %s3210_s30, 1 }
   0xb   : > { %s3311_s14 = scalar_select %p201_p1, %s3206_s29, %s203_s12  }
   0xc   : > { %p3313_p5 = por %p214_p2, %p213_p0  ;;  %p3317_p6 = por %p220_p4, %p219_p3 }
   0xd   : > { %3789 = sst [smem:[#allocation12_spill]] %s3311_s14  ;;  %p227_p8 = scmp.lt.s32.totalorder %s3210_s30, 3 }
   0xe   : > { %s3790_s15 = scalar_select %p3313_p5, 1, 0 }
   0xf   : > { %s3791_s16 = scalar_select %p3317_p6, 1, 0 }
  0x10   : > { %p3784_p9 = scmp.eq.s32.totalorder %s3296_s9, 0  ;;  %p3324_p10 = pnand %p2766_p7, %p227_p8 }
  0x11   : > { %s3212_s18 = smov [#allocation2]   ;;  %s3213_s21 = smov [#allocation5]  }
  0x12   : > { %s3792_s17 = scalar_select %p3324_p10, 1, 0 }
  0x13   : > { %s251_s19 = sshll.u32 %s3212_s18, 4  ;;  %p2975_p11 = pneg %p3324_p10  ;;  %s252_s19 = int_to_ptr.vmem [resolvable:$true] %s251_s19 }
  0x14   : > { %s267_s22 = sshll.u32 %s3213_s21, 4  ;;  %s3084_s25 = scalar_lea.hbm %s3780_s5, 256  ;;  %s3336_s22 = int_to_ptr.vmem [resolvable:$true] %s267_s22 }
  0x15   : > { %p3332_p12 = pnand %p3784_p9, %p2975_p11  ;;  %p3085_p13 = scmp.ne.s32.totalorder %s3780_s5, %s3084_s25 }
  0x16   : > { %p3091_p3 = scmp.lt.u32.totalorder %s3084_s25, %s3780_s5 }
  0x17   : > { %p3086_p0 = pneg %p3332_p12 }
  0x19   : > { %p3087_p1 = pnand %p3086_p0, %p3085_p13 }
  0x1b   : > { %p3088_p2 = pneg %p3087_p1 }
  0x1d   : > { %p3093_p4 = pnand %p3091_p3, %p3088_p2 }
  0x1f   : > { %3096 = shalt.err (!%p3093_p4)
}
  0x20   : > { %s3097_s18 = scalar_lea.vmem %s252_s19, 256  ;;  %p3105_p9 = scmp.lt.s32.totalorder %s252_s19, %s252_s19 }
  0x21   : > { %p3098_p7 = scmp.ne.s32.totalorder %s252_s19, %s3097_s18  ;;  %p3106_p6 = scmp.lt.s32.totalorder %s3097_s18, %s3097_s18 }
  0x23   : > { %p3100_p8 = pnand %p3098_p7, %p3086_p0  ;;  %p3107_p5 = por %p3106_p6, %p3105_p9 }
  0x25   : > { %p3101_p11 = pneg %p3100_p8 }
  0x27   : > { %p3108_p10 = pnand %p3107_p5, %p3101_p11 }
  0x29   : > { %3111 = shalt.err (!%p3108_p10)
}
  0x2a   : > { %s3214_s21 = smov 64   ;;  %s3215_s23 = smov 4  }
  0x2b   : > { %2978 = dma.hbm_to_vmem [thread:$0]  (!%p3332_p12), %s3780_s5, 256, %s252_s19, [#allocation3], %s3214_s21, %s3214_s21, %s3215_s23  }
  0x2c   : > { %s3112_s12 = scalar_lea.hbm %s3782_s7, 256 }
  0x2d   : > { %p3113_p13 = scmp.ne.s32.totalorder %s3782_s7, %s3112_s12  ;;  %p3119_p9 = scmp.lt.u32.totalorder %s3112_s12, %s3782_s7 }
  0x2f   : > { %p3115_p5 = pnand %p3113_p13, %p3086_p0 }
  0x31   : > { %p3116_p6 = pneg %p3115_p5 }
  0x33   : > { %p3121_p10 = pnand %p3119_p9, %p3116_p6 }
  0x35   : > { %3124 = shalt.err (!%p3121_p10)
}
  0x36   : > { %s3125_s19 = scalar_lea.vmem %s3336_s22, 256  ;;  %p3133_p4 = scmp.lt.s32.totalorder %s3336_s22, %s3336_s22 }
  0x37   : > { %p3126_p1 = scmp.ne.s32.totalorder %s3336_s22, %s3125_s19  ;;  %p3134_p7 = scmp.lt.s32.totalorder %s3125_s19, %s3125_s19 }
  0x39   : > { %p3128_p2 = pnand %p3126_p1, %p3086_p0  ;;  %p3135_p8 = por %p3134_p7, %p3133_p4 }
  0x3b   : > { %p3129_p3 = pneg %p3128_p2 }
  0x3d   : > { %p3136_p11 = pnand %p3135_p8, %p3129_p3 }
  0x3f   : > { %3139 = shalt.err (!%p3136_p11)
}
  0x40   : > { %s3216_s29 = smov 128   ;;  %s3217_s14 = smov 8  }
  0x41   : > { %2981 = dma.hbm_to_vmem [thread:$0]  (!%p3332_p12), %s3782_s7, 256, %s3336_s22, [#allocation6], %s3216_s29, %s3216_s29, %s3217_s14  }
  0x42   : > { %p3794_p13 = scmp.ne.s32.totalorder %s3792_s17, 0 }
  0x43   : > { %p3795_p0 = scmp.eq.s32.totalorder (!%p3794_p13), %s3296_s9, 0 }
  0x44   : > { %290 = sbr.rel (%p3794_p13) target bundleno = 3254 (0xcb6), region = 52 }
  0x4b   : > { %3185 = dma.done.wait (%p3795_p0), [#allocation3], 256   ;;  %p3796_p5 = pmov %p3795_p0 }
  0x4c   : > { %p3797_p6 = pmov %p3795_p0 }
  0x4d   : > { %3187 = vsyncadd (%p3796_p5), [#allocation3], 4294967040 }
  0x4e   : > { %3189 = dma.done.wait (%p3797_p6), [#allocation6], 256   ;;  %p3798_p9 = pmov %p3795_p0 }
  0x4f   : > { %p327_p10 = scmp.lt.s32.totalorder %s3296_s9, 1  ;;  %vm335_vm0 = vcmask 261120   ;;  %v3040_v7 = vld [vmem:[%s3776_s1] sm:$0xff]   ;;  %v3218_v8 = vmov 0.0   ;;  %vm3219_vm1 = vmmov 0   ;;  %v3041_v9 = vld [vmem:[%s3776_s1 + $0x8] sm:$0xff]   ;;  %v350_v12 = vlaneseq }
  0x50   : > { %3191 = vsyncadd (%p3798_p9), [#allocation6], 4294967040  ;;  %2857 = vmatprep.subr.bf16.mxu0 %v3218_v8  ;;  %2861 = vmatprep.mubr.msk.bf16.mxu0 %vm3219_vm1, %v3218_v8  ;;  %v3422_v16 = vld [vmem:[#allocation5] sm:$0xff]  ;;  %v3042_v24 = vld [vmem:[%s3777_s2] sm:$0xff]   ;;  %s3220_s24 = smov 104   ;;  %s3221_s17 = smov 120  }
  0x51   : > { %s328_s20 = scalar_select %p327_p10, %s3296_s9, 1  ;;  %2858 = vmatpush3.bf16.msra.mxu0 %v3040_v7  ;;  %2881 = vmatprep.subr.bf16.mxu1 %v3218_v8  ;;  %v3419_v14 = vshrl.u32 %v350_v12, 7  ;;  %v3043_v26 = vld [vmem:[%s3777_s2 + $0x8] sm:$0xff]   ;;  %v3044_v27 = vld [vmem:[%s3778_s3] sm:$0xff]   ;;  %v3223_v44 = vmov 1983009808  }
  0x52   : > { %2859 = vmatprep.subr.bf16.mxu0 %v3218_v8  ;;  %2883 = vmatprep.mubr.msk.bf16.mxu1 %vm3219_vm1, %v3218_v8  ;;  %v3045_v28 = vld [vmem:[%s3778_s3 + $0x8] sm:$0xff]   ;;  %s3222_s26 = smov 112   ;;  %v557_v45 = vunpack.c.l.s4 %v3223_v44  ;;  %v3224_v46 = vmov 1934713408   ;;  %vm1286_vm2 = vcmask 1043456   ;;  %vm1282_vm3 = vcmask 64512  }
  0x53   : > { %s2774_s22 = sshll.u32 %s328_s20, 3  ;;  %v352_v15 = vsub.s32 0, %v3419_v14  ;;  %v357_v17 = vsub.s32 1, %v3419_v14  ;;  %v430_v31 = vsub.s32 5, %v3419_v14  ;;  %v589_v47 = vunpack.c.l.s4 %v3224_v46  ;;  %s3226_s19 = smov 16  }
  0x54   : > { %s3400_s25 = scalar_lea.vmem %s3775_s0, %s2774_s22  ;;  %v558_v48 = vunpack.c.0.s8 %v557_v45  ;;  %s3227_s29 = smov 8   ;;  %vm2395_vm4 = vcmask 130048   ;;  %vm2397_vm5 = vcmask 195584  }
  0x55   : > { %v332_v0 = vld [vmem:[%s3400_s25] sm:$0xff]  ;;  %2860 = vmatpush3.bf16.msra.mxu0 %v3041_v9  ;;  %v353_v18 = vrot.slane %v3422_v16, %v352_v15  ;;  %v358_v21 = vrot.slane %v3422_v16, %v357_v17  ;;  %v431_v34 = vrot.slane %v3422_v16, %v430_v31  ;;  %v590_v51 = vunpack.c.0.s8 %v589_v47  ;;  %s3228_s14 = smov 24   ;;  %s324_s21 = sand.u32 1, %s3202_s28  }
  0x56   : > { %v336_v1 = vsel %vm335_vm0, %v332_v0, 0.0  ;;  %2865 = vmatprep.subr.bf16.mxu0 %v3218_v8  ;;  %v3466_v52 = vsub.s32 %v558_v48, %v3419_v14  ;;  %s2773_s23 = sshll.u32 %s324_s21, 3  ;;  %s2814_s20 = sshll.u32 %s3296_s9, 7 }
  0x57   : > { %337 = vadd.xlane.f32.xlu0 %v336_v1  ;;  %v3469_v58 = vsub.s32 %v590_v51, %v3419_v14  ;;  %s326_s22 = scalar_lea.vmem [#allocation7], %s2773_s23  ;;  %s3732_s10 = scalar_lea.hbm %s3783_s8, %s2814_s20 }
  0x58   : > { %s2671_s9 = scalar_lea.sflag [#allocation4], %s324_s21  ;;  %p3799_p1 = scmp.ne.s32.totalorder %s3790_s15, 0 }
  0x59   : > { %s3229_s13 = smov [#allocation7]  }
  0x5a   : > { %s3144_s18 = sshll.u32 %s3229_s13, 4  ;;  %s3145_s18 = int_to_ptr.vmem [resolvable:$false] %s3144_s18 }
  0xe4   : > { %v338_v2 = vpop.xlane.xlu0 %337 }
  0xe5   : > { %v340_v3 = vmul.f32 0.03125, %v338_v2 }
  0xe7   : > { %v341_v4 = vsub.f32 %v332_v0, %v340_v3 }
  0xe9   : > { %v342_v5 = vmul.f32 %v341_v4, %v341_v4 }
  0xeb   : > { %v343_v6 = vsel %vm335_vm0, %v342_v5, 0.0 }
  0xec   : > { %344 = vadd.xlane.f32.xlu0 %v343_v6 }
 0x179   : > { %v345_v10 = vpop.xlane.xlu0 %344 }
 0x17a   : > { %v346_v11 = vmul.f32 0.03125, %v345_v10 }
 0x17c   : > { %v347_v13 = vadd.f32 1e-05, %v346_v11 }
 0x17e   : > { %3058 = vrsqrt.f32 %v347_v13 }
 0x188   : > { %v3059_v19 = vpop.eup %3058 }
 0x189   : > { %v349_v20 = vmul.f32 %v3059_v19, %v341_v4 }
 0x18b   : > { %v354_v22 = vmul.f32 %v353_v18, %v349_v20  ;;  %v367_v18 = vsub.s32 4, %v3419_v14 }
 0x18d   : > { %v359_v23 = vadd.f32 %v358_v21, %v354_v22  ;;  %v368_v20 = vrot.slane %v3422_v16, %v367_v18 }
 0x18f   : > { %v360_v25 = vpack.c.bf16 %v359_v23, %v359_v23 }
 0x191   : > { %2862 = vmatmul.mubr.msk.bf16.vlgmr.msra.gmra.mrb[0].mxu0 %vm335_vm0, %v360_v25 }
 0x192   : > { %2866 = vmatpush3.bf16.msra.mxu0 %v3042_v24  ;;  %2869 = vmatprep.mubr.msk.bf16.mxu0 %vm3219_vm1, %v3218_v8 }
 0x193   : > { %2867 = vmatprep.subr.bf16.mxu0 %v3218_v8 }
 0x196   : > { %2868 = vmatpush3.bf16.msra.mxu0 %v3043_v26 }
 0x197   : > { %2873 = vmatprep.subr.bf16.mxu0 %v3218_v8 }
 0x199   : > { %2870 = vmatmul.mubr.msk.bf16.vlgmr.msra.gmra.mrb[4].mxu0 %vm335_vm0, %v360_v25 }
 0x19a   : > { %2874 = vmatpush3.bf16.msra.mxu0 %v3044_v27  ;;  %2877 = vmatprep.mubr.msk.bf16.mxu0 %vm3219_vm1, %v3218_v8 }
 0x19b   : > { %2875 = vmatprep.subr.bf16.mxu0 %v3218_v8 }
 0x19e   : > { %2876 = vmatpush3.bf16.msra.mxu0 %v3045_v28 }
 0x19f   : > { %2887 = vmatprep.subr.bf16.mxu0 %v3218_v8 }
 0x1a1   : > { %2878 = vmatmul.mubr.msk.bf16.vlgmr.msra.gmra.mrb[8].mxu0 %vm335_vm0, %v360_v25 }
 0x1a2   : > { %2889 = vmatprep.mubr.msk.bf16.mxu0 %vm3219_vm1, %v3218_v8 }
 0x264   : > { %v3456_v29 = vpop.f32.mrb[0].mxu0 }
 0x265   : > { %v2863_v30 = vpop.f32.mrb[1].mxu0  ;;  %v3485_v23 = vadd.f32 %v3456_v29, %v368_v20 }
 0x266   : > { %v421_v32 = vpop.f32.mrb[2].mxu0 }
 0x267   : > { %v2864_v33 = vpop.f32.mrb[3].mxu0 }
 0x26c   : > { %v478_v35 = vpop.f32.mrb[4].mxu0 }
 0x26d   : > { %v479_v36 = vadd.f32 %v478_v35, %v431_v34  ;;  %v2871_v37 = vpop.f32.mrb[5].mxu0 }
 0x26e   : > { %v481_v38 = vpop.f32.mrb[6].mxu0 }
 0x26f   : > { %637 = vrot.lane.b32.xlu0 %v479_v36, %s3220_s24  ;;  %631 = vrot.lane.b32.xlu1 %v479_v36, %s3221_s17  ;;  %v2872_v39 = vpop.f32.mrb[7].mxu0 }
 0x273   : > { %634 = vrot.lane.b32.xlu1 %v479_v36, %s3222_s26 }
 0x274   : > { %v3463_v40 = vpop.f32.mrb[8].mxu0 }
 0x275   : > { %v2879_v41 = vpop.f32.mrb[9].mxu0 }
 0x276   : > { %v541_v42 = vpop.f32.mrb[10].mxu0 }
 0x277   : > { %v2880_v43 = vpop.f32.mrb[11].mxu0 }
 0x2e1   : > { %v638_v49 = vpop.permute.xlu0 %637  ;;  %v632_v50 = vpop.permute.xlu1 %631 }
 0x2e2   : > { %v656_v53 = vcombine.low %v632_v50, %v638_v49  ;;  %v657_v54 = vcombine.high %v632_v50, %v638_v49 }
 0x2e4   : > { %v664_v59 = vrot.slane %v656_v53, %v3466_v52  ;;  %v671_v60 = vrot.slane %v657_v54, %v3466_v52 }
 0x2e5   : > { %v635_v55 = vpop.permute.xlu1 %634 }
 0x2e6   : > { %v640_v56 = vcombine.low %v479_v36, %v635_v55  ;;  %v641_v57 = vcombine.high %v479_v36, %v635_v55 }
 0x2e8   : > { %v648_v61 = vrot.slane %v640_v56, %v3466_v52  ;;  %v655_v62 = vrot.slane %v641_v57, %v3466_v52  ;;  %v3225_v57 = vmov 0  }
 0x2ea   : > { %v689_v63 = vcombine.high %v655_v62, %v671_v60  ;;  %v672_v0 = vcombine.low %v648_v61, %v664_v59  ;;  %v673_v1 = vcombine.high %v648_v61, %v664_v59  ;;  %v688_v7 = vcombine.low %v655_v62, %v671_v60 }
 0x2ec   : > { %v680_v2 = vrot.slane %v672_v0, %v3469_v58  ;;  %v703_v3 = vrot.slane %v689_v63, %v3469_v58  ;;  %v687_v6 = vrot.slane %v673_v1, %v3469_v58  ;;  %v696_v12 = vrot.slane %v688_v7, %v3469_v58 }
 0x2ee   : > { %v708_v4 = vpack.c.bf16 %v680_v2, %v680_v2  ;;  %v704_v5 = vcombine.high %v680_v2, %v3218_v8  ;;  %v707_v10 = vcombine.high %v703_v3, %v3218_v8  ;;  %v710_v11 = vpack.c.bf16 %v687_v6, %v687_v6 }
 0x2ef   : > { %v712_v19 = vpack.c.bf16 %v696_v12, %v696_v12  ;;  %v714_v21 = vpack.c.bf16 %v703_v3, %v703_v3  ;;  %v705_v22 = vcombine.high %v687_v6, %v3218_v8  ;;  %v706_v25 = vcombine.high %v696_v12, %v3218_v8 }
 0x2f0   : > { %864 = vxpose.xlu1.c.b16.start.end [1/1] (short) (narrow) %v708_v4, 16  ;;  %v709_v9 = vpack.c.bf16 %v704_v5, %v704_v5  ;;  %v715_v13 = vpack.c.bf16 %v707_v10, %v707_v10  ;;  %v490_v5 = vsub.s32 6, %v3419_v14 }
 0x2f1   : > { %v711_v24 = vpack.c.bf16 %v705_v22, %v705_v22  ;;  %v713_v26 = vpack.c.bf16 %v706_v25, %v706_v25 }
 0x2f2   : > { %880 = vxpose.xlu0.c.b16.start.end [1/1] (short) (narrow) %v709_v9, 16 }
 0x2f4   : > { %896 = vxpose.xlu1.c.b16.start.end [1/1] (short) (narrow) %v710_v11, 16  ;;  %v491_v11 = vrot.slane %v3422_v16, %v490_v5 }
 0x2f6   : > { %976 = vxpose.xlu0.c.b16.start.end [1/1] (short) (narrow) %v715_v13, 16  ;;  %v3509_v18 = vadd.f32 %v3463_v40, %v491_v11 }
 0x2f8   : > { %928 = vxpose.xlu1.c.b16.start.end [1/1] (short) (narrow) %v712_v19, 16 }
 0x2fc   : > { %960 = vxpose.xlu1.c.b16.start.end [1/1] (short) (narrow) %v714_v21, 16 }
 0x2ff   : > { %548 = vrot.lane.b32.xlu0 %v3485_v23, %s3222_s26 }
 0x300   : > { %912 = vxpose.xlu1.c.b16.start.end [1/1] (short) (narrow) %v711_v24, 16 }
 0x304   : > { %944 = vxpose.xlu1.c.b16.start.end [1/1] (short) (narrow) %v713_v26, 16 }
 0x308   : > { %545 = vrot.lane.b32.xlu1 %v3485_v23, %s3221_s17 }
 0x30c   : > { %551 = vrot.lane.b32.xlu1 %v3485_v23, %s3220_s24 }
 0x356   : > { %v872_v27 = vpop.trf.xlu1 }
 0x358   : > { %v888_v29 = vpop.trf.xlu0 }
 0x35a   : > { %v904_v28 = vpop.trf.xlu1 }
 0x35c   : > { %v984_v34 = vpop.trf.xlu0 }
 0x35e   : > { %v936_v30 = vpop.trf.xlu1 }
 0x35f   : > { %v992_v35 = vcombine.low %v872_v27, %v936_v30 }
 0x361   : > { %v999_v39 = vrot.slane %v992_v35, %v3466_v52 }
 0x362   : > { %v968_v31 = vpop.trf.xlu1 }
 0x363   : > { %v1000_v32 = vcombine.low %v904_v28, %v968_v31 }
 0x365   : > { %v1007_v36 = vrot.slane %v1000_v32, %v3466_v52 }
 0x366   : > { %v920_v33 = vpop.trf.xlu1 }
 0x367   : > { %v1034_v37 = vcombine.low %v920_v33, %v984_v34  ;;  %v1008_v42 = vcombine.low %v999_v39, %v1007_v36  ;;  %v1009_v43 = vcombine.high %v999_v39, %v1007_v36 }
 0x369   : > { %v1041_v44 = vrot.slane %v1034_v37, %v3466_v52  ;;  %v1016_v48 = vrot.slane %v1008_v42, %v3469_v58  ;;  %v1023_v49 = vrot.slane %v1009_v43, %v3469_v58 }
 0x36a   : > { %v952_v38 = vpop.trf.xlu1 }
 0x36b   : > { %v1026_v41 = vcombine.low %v888_v29, %v952_v38  ;;  %v1064_v60 = vshrl.u32 %v1016_v48, 16  ;;  %v1080_v61 = vshrl.u32 %v1023_v49, 16  ;;  %v1024_v62 = vcombine.high %v1016_v48, %v3225_v57 }
 0x36c   : > { %v1025_v4 = vcombine.high %v1023_v49, %v3225_v57 }
 0x36d   : > { %v1033_v45 = vrot.slane %v1026_v41, %v3466_v52  ;;  %v1072_v3 = vshrl.u32 %v1024_v62, 16 }
 0x36e   : > { %v1088_v10 = vshrl.u32 %v1025_v4, 16 }
 0x36f   : > { %v1042_v46 = vcombine.low %v1033_v45, %v1041_v44  ;;  %v1043_v47 = vcombine.high %v1033_v45, %v1041_v44 }
 0x371   : > { %v1050_v50 = vrot.slane %v1042_v46, %v3469_v58  ;;  %v1057_v51 = vrot.slane %v1043_v47, %v3469_v58  ;;  %v549_v21 = vpop.permute.xlu0 %548 }
 0x372   : > { %v554_v16 = vcombine.low %v3485_v23, %v549_v21  ;;  %v555_v25 = vcombine.high %v3485_v23, %v549_v21 }
 0x373   : > { %v1078_v53 = vpack.i.b16 %v1057_v51, %v1023_v49  ;;  %v1062_v54 = vpack.i.b16 %v1050_v50, %v1016_v48  ;;  %v1065_v55 = vshrl.u32 %v1050_v50, 16  ;;  %v1081_v56 = vshrl.u32 %v1057_v51, 16 }
 0x374   : > { %v1058_v59 = vcombine.high %v1050_v50, %v3225_v57  ;;  %v1059_v2 = vcombine.high %v1057_v51, %v3225_v57  ;;  %v562_v27 = vrot.slane %v554_v16, %v3466_v52  ;;  %v569_v28 = vrot.slane %v555_v25, %v3466_v52 }
 0x375   : > { %1156 = vxpose.xlu0.c.b16.start.end [1/1] (short) (narrow) %v1078_v53, 16  ;;  %1092 = vxpose.xlu1.c.b16.start.end [1/1] (short) (narrow) %v1062_v54, 16  ;;  %v1066_v63 = vpack.i.b16 %v1065_v55, %v1064_v60  ;;  %v1082_v0 = vpack.i.b16 %v1081_v56, %v1080_v61 }
 0x376   : > { %v1073_v1 = vshrl.u32 %v1058_v59, 16  ;;  %v1070_v7 = vpack.i.b16 %v1058_v59, %v1024_v62  ;;  %v1089_v9 = vshrl.u32 %v1059_v2, 16  ;;  %v1086_v13 = vpack.i.b16 %v1059_v2, %v1025_v4 }
 0x378   : > { %v1074_v6 = vpack.i.b16 %v1073_v1, %v1072_v3  ;;  %v1090_v12 = vpack.i.b16 %v1089_v9, %v1088_v10 }
 0x379   : > { %1108 = vxpose.xlu0.c.b16.start.end [1/1] (short) (narrow) %v1066_v63, 16  ;;  %1172 = vxpose.xlu1.c.b16.start.end [1/1] (short) (narrow) %v1082_v0, 16 }
 0x37a   : > { %v546_v19 = vpop.permute.xlu1 %545 }
 0x37d   : > { %1140 = vxpose.xlu1.c.b16.start.end [1/1] (short) (narrow) %v1074_v6, 16  ;;  %1124 = vxpose.xlu0.c.b16.start.end [1/1] (short) (narrow) %v1070_v7, 16 }
 0x37e   : > { %v552_v20 = vpop.permute.xlu1 %551 }
 0x37f   : > { %v570_v22 = vcombine.low %v546_v19, %v552_v20  ;;  %v571_v24 = vcombine.high %v546_v19, %v552_v20 }
 0x381   : > { %1204 = vxpose.xlu1.c.b16.start.end [1/1] (short) (narrow) %v1090_v12, 16  ;;  %1188 = vxpose.xlu0.c.b16.start.end [1/1] (short) (narrow) %v1086_v13, 16  ;;  %v578_v26 = vrot.slane %v570_v22, %v3466_v52  ;;  %v585_v40 = vrot.slane %v571_v24, %v3466_v52 }
 0x383   : > { %v586_v30 = vcombine.low %v562_v27, %v578_v26  ;;  %v587_v29 = vcombine.high %v562_v27, %v578_v26  ;;  %v602_v31 = vcombine.low %v569_v28, %v585_v40  ;;  %v603_v32 = vcombine.high %v569_v28, %v585_v40 }
 0x385   : > { %720 = vrot.lane.b32.xlu1 %v3509_v18, %s3222_s26  ;;  %v594_v33 = vrot.slane %v586_v30, %v3469_v58  ;;  %v601_v34 = vrot.slane %v587_v29, %v3469_v58  ;;  %v610_v35 = vrot.slane %v602_v31, %v3469_v58  ;;  %v617_v23 = vrot.slane %v603_v32, %v3469_v58 }
 0x387   : > { %v618_v38 = vcombine.high %v594_v33, %v3218_v8  ;;  %v619_v39 = vcombine.high %v601_v34, %v3218_v8  ;;  %v620_v41 = vcombine.high %v610_v35, %v3218_v8  ;;  %v621_v42 = vcombine.high %v617_v23, %v3218_v8 }
 0x388   : > { %v2784_v47 = vpack.c.bf16 %v610_v35, %v594_v33  ;;  %v2785_v48 = vpack.c.bf16 %v617_v23, %v601_v34 }
 0x389   : > { %v2786_v45 = vpack.c.bf16 %v620_v41, %v618_v38  ;;  %v2787_v46 = vpack.c.bf16 %v621_v42, %v619_v39 }
 0x38a   : > { %717 = vrot.lane.b32.xlu0 %v3509_v18, %s3221_s17  ;;  %v809_v56 = vrot.slane %v2784_v47, %v3466_v52  ;;  %v817_v59 = vrot.slane %v2785_v48, %v3466_v52 }
 0x38b   : > { %v834_v51 = vrot.slane %v2786_v45, %v3466_v52  ;;  %v842_v53 = vrot.slane %v2787_v46, %v3466_v52 }
 0x38c   : > { %v818_v5 = vcombine.low %v809_v56, %v817_v59 }
 0x38d   : > { %v843_v0 = vcombine.low %v834_v51, %v842_v53 }
 0x38e   : > { %v825_v12 = vrot.slane %v818_v5, %v3469_v58 }
 0x38f   : > { %v850_v11 = vrot.slane %v843_v0, %v3469_v58 }
 0x390   : > { %v855_v29 = vshrl.u32 %v825_v12, 16  ;;  %v826_v23 = vcombine.high %v825_v12, %v3225_v57 }
 0x391   : > { %v856_v25 = vshrl.u32 %v850_v11, 16  ;;  %v854_v30 = vpack.i.b16 %v850_v11, %v825_v12  ;;  %v851_v34 = vcombine.high %v850_v11, %v3225_v57 }
 0x392   : > { %v861_v38 = vshrl.u32 %v826_v23, 16 }
 0x393   : > { %v857_v33 = vpack.i.b16 %v856_v25, %v855_v29 }
 0x3db   : > { %v1100_v36 = vpop.trf.xlu1  ;;  %v1164_v37 = vpop.trf.xlu0 }
 0x3dc   : > { %v1220_v54 = vcombine.low %v1100_v36, %v1164_v37  ;;  %v862_v36 = vshrl.u32 %v851_v34, 16  ;;  %v860_v37 = vpack.i.b16 %v851_v34, %v826_v23 }
 0x3de   : > { %v1227_v1 = vrot.slane %v1220_v54, %v3466_v52  ;;  %v863_v39 = vpack.i.b16 %v862_v36, %v861_v38 }
 0x3df   : > { %v1180_v43 = vpop.trf.xlu1  ;;  %v1116_v44 = vpop.trf.xlu0 }
 0x3e0   : > { %v1245_v55 = vcombine.low %v1116_v44, %v1180_v43 }
 0x3e2   : > { %v1252_v2 = vrot.slane %v1245_v55, %v3466_v52 }
 0x3e3   : > { %v1148_v49 = vpop.trf.xlu1  ;;  %v1132_v50 = vpop.trf.xlu0 }
 0x3e7   : > { %v1212_v60 = vpop.trf.xlu1  ;;  %v1196_v61 = vpop.trf.xlu0 }
 0x3e8   : > { %v1253_v62 = vcombine.low %v1148_v49, %v1212_v60  ;;  %v1228_v63 = vcombine.low %v1132_v50, %v1196_v61 }
 0x3ea   : > { %v1260_v3 = vrot.slane %v1253_v62, %v3466_v52  ;;  %v1235_v4 = vrot.slane %v1228_v63, %v3466_v52 }
 0x3ec   : > { %v1261_v6 = vcombine.low %v1252_v2, %v1260_v3  ;;  %v1236_v7 = vcombine.low %v1227_v1, %v1235_v4 }
 0x3ee   : > { %v1268_v9 = vrot.slane %v1261_v6, %v3469_v58  ;;  %v1243_v10 = vrot.slane %v1236_v7, %v3469_v58 }
 0x3f0   : > { %v1272_v13 = vpack.i.b16 %v1268_v9, %v1243_v10  ;;  %v1273_v19 = vshrl.u32 %v1243_v10, 16  ;;  %v1274_v20 = vshrl.u32 %v1268_v9, 16  ;;  %v1244_v21 = vcombine.high %v1243_v10, %v3225_v57 }
 0x3f1   : > { %v1269_v22 = vcombine.high %v1268_v9, %v3225_v57 }
 0x3f2   : > { %v1288_v24 = vsel %vm1286_vm2, %v1272_v13, 0  ;;  %v1275_v16 = vpack.i.b16 %v1274_v20, %v1273_v19  ;;  %v1279_v26 = vshrl.u32 %v1244_v21, 16 }
 0x3f3   : > { %2882 = vmatpush3.bf16.msra.mxu1 %v1288_v24  ;;  %v1278_v40 = vpack.i.b16 %v1269_v22, %v1244_v21  ;;  %v1280_v27 = vshrl.u32 %v1269_v22, 16 }
 0x3f4   : > { %v1334_v28 = vsel %vm1286_vm2, %v1275_v16, 0  ;;  %2893 = vmatprep.subr.bf16.mxu1 %v3218_v8 }
 0x3f5   : > { %2888 = vmatpush3.bf16.msra.mxu0 %v1334_v28  ;;  %v1281_v31 = vpack.i.b16 %v1280_v27, %v1279_v26  ;;  %v1380_v32 = vsel %vm1286_vm2, %v1278_v40, 0 }
 0x3f6   : > { %2884 = vmatmul.mubr.msk.bf16.vlgmr.msra.gmra.mrb[0].mxu1 %vm1282_vm3, %v854_v30  ;;  %2899 = vmatprep.subr.bf16.mxu0 %v3218_v8 }
 0x3f7   : > { %2894 = vmatpush3.bf16.msra.mxu1 %v1380_v32  ;;  %2895 = vmatprep.mubr.msk.bf16.mxu1 %vm3219_vm1, %v3218_v8  ;;  %v1426_v35 = vsel %vm1286_vm2, %v1281_v31, 0  ;;  %v721_v63 = vpop.permute.xlu1 %720 }
 0x3f8   : > { %2890 = vmatmul.mubr.msk.bf16.vlgmr.msra.gmra.mrb[12].mxu0 %vm1282_vm3, %v857_v33  ;;  %2905 = vmatprep.subr.bf16.mxu1 %v3218_v8  ;;  %v726_v2 = vcombine.low %v3509_v18, %v721_v63  ;;  %v727_v5 = vcombine.high %v3509_v18, %v721_v63 }
 0x3f9   : > { %2900 = vmatpush3.bf16.msra.mxu0 %v1426_v35  ;;  %2901 = vmatprep.mubr.msk.bf16.mxu0 %vm3219_vm1, %v3218_v8 }
 0x3fa   : > { %2911 = vmatprep.subr.bf16.mxu0 %v3218_v8  ;;  %v734_v9 = vrot.slane %v726_v2, %v3466_v52  ;;  %v741_v12 = vrot.slane %v727_v5, %v3466_v52 }
 0x3fc   : > { %v718_v3 = vpop.permute.xlu0 %717 }
 0x3fe   : > { %2896 = vmatmul.mubr.msk.bf16.vlgmr.msra.gmra.mrb[4].mxu1 %vm1282_vm3, %v860_v37 }
 0x3ff   : > { %2907 = vmatprep.mubr.msk.bf16.mxu1 %vm3219_vm1, %v3218_v8 }
 0x400   : > { %2902 = vmatmul.mubr.msk.bf16.vlgmr.msra.gmra.mrb[16].mxu0 %vm1282_vm3, %v863_v39 }
 0x401   : > { %2913 = vmatprep.mubr.msk.bf16.mxu0 %vm3219_vm1, %v3218_v8 }
 0x4c9   : > { %v3565_v41 = vpop.f32.mrb[0].mxu1 }
 0x4ca   : > { %v2885_v42 = vpop.f32.mrb[1].mxu1  ;;  %v1468_v43 = vsel %vm1282_vm3, %v3565_v41, -inf }
 0x4cb   : > { %v1327_v44 = vpop.f32.mrb[2].mxu1  ;;  %1469 = vmax.xlane.f32.xlu0 %v1468_v43  ;;  %v3569_v45 = vpop.f32.mrb[12].mxu0 }
 0x4cc   : > { %v2886_v46 = vpop.f32.mrb[3].mxu1  ;;  %v2891_v47 = vpop.f32.mrb[13].mxu0  ;;  %v1471_v48 = vsel %vm1282_vm3, %v3569_v45, -inf }
 0x4cd   : > { %1472 = vmax.xlane.f32.xlu1 %v1471_v48  ;;  %v1373_v49 = vpop.f32.mrb[14].mxu0 }
 0x4ce   : > { %v2892_v50 = vpop.f32.mrb[15].mxu0 }
 0x4d1   : > { %v3573_v51 = vpop.f32.mrb[4].mxu1 }
 0x4d2   : > { %v2897_v53 = vpop.f32.mrb[5].mxu1  ;;  %v1474_v27 = vsel %vm1282_vm3, %v3573_v51, -inf }
 0x4d3   : > { %v1419_v54 = vpop.f32.mrb[6].mxu1  ;;  %v3575_v55 = vpop.f32.mrb[16].mxu0 }
 0x4d4   : > { %v2898_v56 = vpop.f32.mrb[7].mxu1  ;;  %v2903_v59 = vpop.f32.mrb[17].mxu0  ;;  %v1477_v62 = vsel %vm1282_vm3, %v3575_v55, -inf }
 0x4d5   : > { %v1465_v60 = vpop.f32.mrb[18].mxu0 }
 0x4d6   : > { %v2904_v61 = vpop.f32.mrb[19].mxu0 }
 0x4de   : > { %723 = vrot.lane.b32.xlu1 %v3509_v18, %s3220_s24  ;;  %s2684_s24 = sshll.u32 %s326_s22, 4  ;;  %s3734_s24 = int_to_ptr.vmem [resolvable:$true] %s2684_s24 }
 0x4df   : > { %s3140_s12 = scalar_lea.vmem %s3734_s24, 128  ;;  %p3147_p4 = scmp.lt.s32.totalorder %s3734_s24, %s3145_s18 }
 0x4e0   : > { %p3141_p12 = scmp.ne.s32.totalorder %s3734_s24, %s3140_s12 }
 0x4e2   : > { %p3142_p2 = pnand %p3141_p12, %p3799_p1 }
 0x4e4   : > { %p3143_p3 = pneg %p3142_p2 }
 0x502   : > { %1478 = vmax.xlane.f32.xlu1 %v1477_v62 }
 0x558   : > { %v1470_v36 = vpop.xlane.xlu0 %1469 }
 0x55a   : > { %v3581_v0 = vpop.xlane.xlu1 %1472 }
 0x55b   : > { %v1481_v1 = vsub.f32 %v3569_v45, %v3581_v0 }
 0x55e   : > { %v724_v4 = vpop.permute.xlu1 %723 }
 0x55f   : > { %v742_v6 = vcombine.low %v718_v3, %v724_v4  ;;  %v743_v7 = vcombine.high %v718_v3, %v724_v4 }
 0x561   : > { %v750_v10 = vrot.slane %v742_v6, %v3466_v52  ;;  %v757_v11 = vrot.slane %v743_v7, %v3466_v52 }
 0x563   : > { %v758_v13 = vcombine.low %v734_v9, %v750_v10  ;;  %v774_v20 = vcombine.low %v741_v12, %v757_v11  ;;  %v775_v16 = vcombine.high %v741_v12, %v757_v11  ;;  %v759_v28 = vcombine.high %v734_v9, %v750_v10 }
 0x565   : > { %v766_v19 = vrot.slane %v758_v13, %v3469_v58  ;;  %v782_v18 = vrot.slane %v774_v20, %v3469_v58  ;;  %v789_v26 = vrot.slane %v775_v16, %v3469_v58  ;;  %v773_v30 = vrot.slane %v759_v28, %v3469_v58 }
 0x566   : > { %v1480_v13 = vsub.f32 %v3565_v41, %v1470_v36  ;;  %v1486_v41 = vmul.f32 1.442695, %v1481_v1 }
 0x567   : > { %v794_v21 = vpack.c.bf16 %v766_v19, %v766_v19  ;;  %v790_v22 = vcombine.high %v766_v19, %v3218_v8  ;;  %v798_v25 = vpack.c.bf16 %v782_v18, %v782_v18  ;;  %v800_v40 = vpack.c.bf16 %v789_v26, %v789_v26 }
 0x568   : > { %v796_v29 = vpack.c.bf16 %v773_v30, %v773_v30  ;;  %v791_v31 = vcombine.high %v773_v30, %v3218_v8  ;;  %v792_v33 = vcombine.high %v782_v18, %v3218_v8  ;;  %v793_v35 = vcombine.high %v789_v26, %v3218_v8 }
 0x569   : > { %1516 = vxpose.xlu0.c.b16.start.end [1/1] (short) (narrow) %v794_v21, 16  ;;  %v795_v24 = vpack.c.bf16 %v790_v22, %v790_v22  ;;  %v1484_v16 = vmul.f32 1.442695, %v1480_v13 }
 0x56a   : > { %v797_v32 = vpack.c.bf16 %v791_v31, %v791_v31  ;;  %v799_v34 = vpack.c.bf16 %v792_v33, %v792_v33  ;;  %v801_v23 = vpack.c.bf16 %v793_v35, %v793_v35 }
 0x56b   : > { %1532 = vxpose.xlu1.c.b16.start.end [1/1] (short) (narrow) %v795_v24, 16  ;;  %3060 = vpow2.f32 %v1484_v16 }
 0x56c   : > { %3062 = vpow2.f32 %v1486_v41 }
 0x56f   : > { %1580 = vxpose.xlu1.c.b16.start.end [1/1] (short) (narrow) %v798_v25, 16 }
 0x573   : > { %1612 = vxpose.xlu1.c.b16.start.end [1/1] (short) (narrow) %v800_v40, 16 }
 0x576   : > { %1475 = vmax.xlane.f32.xlu0 %v1474_v27 }
 0x58f   : > { %v1479_v37 = vpop.xlane.xlu1 %1478 }
 0x590   : > { %v1483_v27 = vsub.f32 %v3575_v55, %v1479_v37 }
 0x5a3   : > { %1548 = vxpose.xlu0.c.b16.start.end [1/1] (short) (narrow) %v796_v29, 16 }
 0x5a7   : > { %1564 = vxpose.xlu0.c.b16.start.end [1/1] (short) (narrow) %v797_v32, 16  ;;  %v1490_v32 = vmul.f32 1.442695, %v1483_v27 }
 0x5ab   : > { %1596 = vxpose.xlu0.c.b16.start.end [1/1] (short) (narrow) %v799_v34, 16 }
 0x5af   : > { %1628 = vxpose.xlu0.c.b16.start.end [1/1] (short) (narrow) %v801_v23, 16 }
 0x5cf   : > { %v1524_v38 = vpop.trf.xlu0 }
 0x5d1   : > { %v1540_v39 = vpop.trf.xlu1 }
 0x5d5   : > { %v1588_v43 = vpop.trf.xlu1 }
 0x5d6   : > { %v1644_v49 = vcombine.low %v1524_v38, %v1588_v43 }
 0x5d8   : > { %v1651_v54 = vrot.slane %v1644_v49, %v3466_v52 }
 0x5d9   : > { %v1620_v46 = vpop.trf.xlu1 }
 0x603   : > { %v1476_v42 = vpop.xlane.xlu0 %1475 }
 0x604   : > { %v1482_v25 = vsub.f32 %v3573_v51, %v1476_v42  ;;  %v3061_v51 = vpop.eup %3060 }
 0x605   : > { %v3063_v33 = vpop.eup %3062  ;;  %v1492_v34 = vsel %vm1282_vm3, %v3061_v51, 0.0 }
 0x606   : > { %v1488_v29 = vmul.f32 1.442695, %v1482_v25  ;;  %v1495_v55 = vsel %vm1282_vm3, %v3063_v33, 0.0 }
 0x608   : > { %3064 = vpow2.f32 %v1488_v29 }
 0x609   : > { %v1556_v44 = vpop.trf.xlu0  ;;  %3066 = vpow2.f32 %v1490_v32 }
 0x60a   : > { %v1652_v47 = vcombine.low %v1556_v44, %v1620_v46 }
 0x60c   : > { %v1659_v50 = vrot.slane %v1652_v47, %v3466_v52 }
 0x60d   : > { %v1572_v48 = vpop.trf.xlu0 }
 0x60e   : > { %v1660_v59 = vcombine.low %v1651_v54, %v1659_v50  ;;  %v1661_v6 = vcombine.high %v1651_v54, %v1659_v50 }
 0x610   : > { %v1668_v2 = vrot.slane %v1660_v59, %v3469_v58  ;;  %v1675_v18 = vrot.slane %v1661_v6, %v3469_v58 }
 0x611   : > { %v1604_v53 = vpop.trf.xlu0 }
 0x612   : > { %v1678_v56 = vcombine.low %v1540_v39, %v1604_v53  ;;  %v1716_v7 = vshrl.u32 %v1668_v2, 16  ;;  %v1676_v11 = vcombine.high %v1668_v2, %v3225_v57  ;;  %v1732_v30 = vshrl.u32 %v1675_v18, 16  ;;  %v3065_v45 = vpop.eup %3064 }
 0x613   : > { %v3067_v0 = vpop.eup %3066  ;;  %v1498_v1 = vsel %vm1282_vm3, %v3065_v45, 0.0  ;;  %v1677_v36 = vcombine.high %v1675_v18, %v3225_v57 }
 0x614   : > { %v1685_v62 = vrot.slane %v1678_v56, %v3466_v52  ;;  %v1724_v24 = vshrl.u32 %v1676_v11, 16  ;;  %v1501_v35 = vsel %vm1282_vm3, %v3067_v0, 0.0 }
 0x615   : > { %v1636_v60 = vpop.trf.xlu0  ;;  %v1740_v39 = vshrl.u32 %v1677_v36, 16 }
 0x616   : > { %v1686_v61 = vcombine.low %v1572_v48, %v1636_v60 }
 0x618   : > { %v1693_v63 = vrot.slane %v1686_v61, %v3466_v52 }
 0x61a   : > { %v1694_v3 = vcombine.low %v1685_v62, %v1693_v63  ;;  %v1695_v4 = vcombine.high %v1685_v62, %v1693_v63 }
 0x61c   : > { %v1702_v5 = vrot.slane %v1694_v3, %v3469_v58  ;;  %v1709_v21 = vrot.slane %v1695_v4, %v3469_v58 }
 0x61e   : > { %v1714_v9 = vpack.i.b16 %v1702_v5, %v1668_v2  ;;  %v1717_v10 = vshrl.u32 %v1702_v5, 16  ;;  %v1710_v12 = vcombine.high %v1702_v5, %v3225_v57  ;;  %v1733_v40 = vshrl.u32 %v1709_v21, 16 }
 0x61f   : > { %v1730_v28 = vpack.i.b16 %v1709_v21, %v1675_v18  ;;  %v1711_v23 = vcombine.high %v1709_v21, %v3225_v57 }
 0x620   : > { %1744 = vxpose.xlu1.c.b16.start.end [1/1] (short) (narrow) %v1714_v9, 16  ;;  %v1718_v19 = vpack.i.b16 %v1717_v10, %v1716_v7  ;;  %v1725_v20 = vshrl.u32 %v1710_v12, 16  ;;  %v1722_v22 = vpack.i.b16 %v1710_v12, %v1676_v11  ;;  %v1734_v31 = vpack.i.b16 %v1733_v40, %v1732_v30 }
 0x621   : > { %v1741_v37 = vshrl.u32 %v1711_v23, 16  ;;  %v1738_v38 = vpack.i.b16 %v1711_v23, %v1677_v36 }
 0x622   : > { %1760 = vxpose.xlu0.c.b16.start.end [1/1] (short) (narrow) %v1718_v19, 16  ;;  %v1726_v26 = vpack.i.b16 %v1725_v20, %v1724_v24 }
 0x623   : > { %v1742_v42 = vpack.i.b16 %v1741_v37, %v1740_v39 }
 0x624   : > { %1776 = vxpose.xlu1.c.b16.start.end [1/1] (short) (narrow) %v1722_v22, 16 }
 0x626   : > { %1792 = vxpose.xlu0.c.b16.start.end [1/1] (short) (narrow) %v1726_v26, 16 }
 0x628   : > { %1808 = vxpose.xlu1.c.b16.start.end [1/1] (short) (narrow) %v1730_v28, 16 }
 0x62a   : > { %1824 = vxpose.xlu0.c.b16.start.end [1/1] (short) (narrow) %v1734_v31, 16 }
 0x635   : > { %1493 = vadd.xlane.f32.xlu1 %v1492_v34 }
 0x637   : > { %1496 = vadd.xlane.f32.xlu0 %v1495_v55 }
 0x639   : > { %1499 = vadd.xlane.f32.xlu1 %v1498_v1 }
 0x63b   : > { %1502 = vadd.xlane.f32.xlu0 %v1501_v35 }
 0x666   : > { %1840 = vxpose.xlu1.c.b16.start.end [1/1] (short) (narrow) %v1738_v38, 16 }
 0x668   : > { %1856 = vxpose.xlu0.c.b16.start.end [1/1] (short) (narrow) %v1742_v42, 16 }
 0x686   : > { %v1752_v43 = vpop.trf.xlu1 }
 0x688   : > { %v1768_v44 = vpop.trf.xlu0 }
 0x68a   : > { %v1784_v46 = vpop.trf.xlu1 }
 0x68c   : > { %v1800_v47 = vpop.trf.xlu0 }
 0x68e   : > { %v1816_v48 = vpop.trf.xlu1 }
 0x68f   : > { %v1872_v59 = vcombine.low %v1752_v43, %v1816_v48 }
 0x690   : > { %v1832_v49 = vpop.trf.xlu0 }
 0x691   : > { %v1897_v62 = vcombine.low %v1768_v44, %v1832_v49  ;;  %v1879_v5 = vrot.slane %v1872_v59, %v3466_v52 }
 0x693   : > { %v1904_v12 = vrot.slane %v1897_v62, %v3466_v52 }
 0x6c2   : > { %v1494_v50 = vpop.xlane.xlu1 %1493 }
 0x6c3   : > { %3068 = vrcp.f32 %v1494_v50 }
 0x6c4   : > { %v1497_v53 = vpop.xlane.xlu0 %1496 }
 0x6c5   : > { %3070 = vrcp.f32 %v1497_v53 }
 0x6c6   : > { %v1500_v54 = vpop.xlane.xlu1 %1499 }
 0x6c7   : > { %3072 = vrcp.f32 %v1500_v54 }
 0x6c8   : > { %v1503_v56 = vpop.xlane.xlu0 %1502 }
 0x6c9   : > { %3074 = vrcp.f32 %v1503_v56 }
 0x6cc   : > { %v1848_v60 = vpop.trf.xlu1 }
 0x6cd   : > { %v3069_v61 = vpop.eup %3068  ;;  %v1880_v63 = vcombine.low %v1784_v46, %v1848_v60 }
 0x6ce   : > { %v1864_v2 = vpop.trf.xlu0  ;;  %v1508_v3 = vmul.f32 %v3069_v61, %v3061_v51 }
 0x6cf   : > { %v3071_v4 = vpop.eup %3070  ;;  %v1887_v6 = vrot.slane %v1880_v63, %v3466_v52  ;;  %v1905_v7 = vcombine.low %v1800_v47, %v1864_v2 }
 0x6d0   : > { %v1512_v9 = vpack.c.bf16 %v1508_v3, %v1508_v3  ;;  %v1509_v10 = vmul.f32 %v3071_v4, %v3063_v33 }
 0x6d1   : > { %v3073_v11 = vpop.eup %3072  ;;  %v1888_v13 = vcombine.low %v1879_v5, %v1887_v6  ;;  %v1912_v19 = vrot.slane %v1905_v7, %v3466_v52 }
 0x6d2   : > { %v1938_v20 = vsel %vm1282_vm3, %v1512_v9, 0  ;;  %v1513_v21 = vpack.c.bf16 %v1509_v10, %v1509_v10  ;;  %v1510_v22 = vmul.f32 %v3073_v11, %v3065_v45 }
 0x6d3   : > { %v3075_v24 = vpop.eup %3074  ;;  %v1895_v18 = vrot.slane %v1888_v13, %v3469_v58  ;;  %v1913_v16 = vcombine.low %v1904_v12, %v1912_v19  ;;  %2906 = vmatpush3.bf16.xpose.msra.mxu1 %v1938_v20  ;;  %v3046_v12 = vld [vmem:[%s3779_s4] sm:$0xff]  }
 0x6d4   : > { %v1984_v25 = vsel %vm1282_vm3, %v1513_v21, 0  ;;  %2917 = vmatprep.subr.bf16.mxu1 %v3218_v8  ;;  %v1511_v26 = vmul.f32 %v3075_v24, %v3067_v0  ;;  %v1514_v41 = vpack.c.bf16 %v1510_v22, %v1510_v22 }
 0x6d5   : > { %v1920_v40 = vrot.slane %v1913_v16, %v3469_v58  ;;  %2912 = vmatpush3.bf16.xpose.msra.mxu0 %v1984_v25  ;;  %v1925_v27 = vshrl.u32 %v1895_v18, 16  ;;  %v1896_v33 = vcombine.high %v1895_v18, %v3225_v57  ;;  %v3047_v25 = vld [vmem:[%s3779_s4 + $0x8] sm:$0xff]  }
 0x6d6   : > { %2923 = vmatprep.subr.bf16.mxu0 %v3218_v8  ;;  %v1515_v29 = vpack.c.bf16 %v1511_v26, %v1511_v26  ;;  %v2030_v51 = vsel %vm1282_vm3, %v1514_v41, 0 }
 0x6d7   : > { %v1924_v28 = vpack.i.b16 %v1920_v40, %v1895_v18  ;;  %v1926_v30 = vshrl.u32 %v1920_v40, 16  ;;  %v1921_v32 = vcombine.high %v1920_v40, %v3225_v57  ;;  %v1931_v55 = vshrl.u32 %v1896_v33, 16 }
 0x6d8   : > { %v2076_v34 = vsel %vm1282_vm3, %v1515_v29, 0 }
 0x6d9   : > { %v1927_v31 = vpack.i.b16 %v1926_v30, %v1925_v27  ;;  %v1932_v45 = vshrl.u32 %v1921_v32, 16  ;;  %v1930_v0 = vpack.i.b16 %v1921_v32, %v1896_v33 }
 0x6da   : > { %2908 = vmatmul.mubr.msk.bf16.vlgmr.msra.gmra.mrb[8].mxu1 %vm1282_vm3, %v1924_v28 }
 0x6db   : > { %2918 = vmatpush3.bf16.xpose.msra.mxu1 %v2030_v51  ;;  %2919 = vmatprep.mubr.msk.bf16.mxu1 %vm3219_vm1, %v3218_v8  ;;  %v1933_v1 = vpack.i.b16 %v1932_v45, %v1931_v55 }
 0x6dc   : > { %2914 = vmatmul.mubr.msk.bf16.vlgmr.msra.gmra.mrb[20].mxu0 %vm1282_vm3, %v1927_v31  ;;  %2929 = vmatprep.subr.bf16.mxu1 %v3218_v8 }
 0x6dd   : > { %2924 = vmatpush3.bf16.xpose.msra.mxu0 %v2076_v34  ;;  %2925 = vmatprep.mubr.msk.bf16.mxu0 %vm3219_vm1, %v3218_v8 }
 0x6de   : > { %2937 = vmatprep.subr.bf16.mxu0 %v3218_v8 }
 0x6e2   : > { %2920 = vmatmul.mubr.msk.bf16.vlgmr.msra.gmra.mrb[12].mxu1 %vm1282_vm3, %v1930_v0 }
 0x6e3   : > { %2933 = vmatprep.mubr.msk.bf16.mxu1 %vm3219_vm1, %v3218_v8  ;;  %2930 = vmatpush3.bf16.msra.mxu1 %v3046_v12 }
 0x6e4   : > { %2926 = vmatmul.mubr.msk.bf16.vlgmr.msra.gmra.mrb[24].mxu0 %vm1282_vm3, %v1933_v1  ;;  %2931 = vmatprep.subr.bf16.mxu1 %v3218_v8 }
 0x6e5   : > { %2941 = vmatprep.mubr.msk.bf16.mxu0 %vm3219_vm1, %v3218_v8 }
 0x6e7   : > { %2932 = vmatpush3.bf16.msra.mxu1 %v3047_v25  ;;  %v3056_v25 = vld [vmem:[%s3781_s6 + $0x30] sm:$0xff]  }
 0x6e8   : > { %2945 = vmatprep.subr.bf16.mxu1 %v3218_v8 }
 0x7ad   : > { %v1974_v57 = vpop.f32.mrb[8].mxu1 }
 0x7ae   : > { %2118 = vxpose.xlu1.b32.start.end [1/1] (short) (narrow) %v1974_v57, 8  ;;  %v2909_v35 = vpop.f32.mrb[9].mxu1 }
 0x7af   : > { %v1977_v23 = vpop.f32.mrb[10].mxu1  ;;  %v2020_v36 = vpop.f32.mrb[20].mxu0 }
 0x7b0   : > { %v2910_v37 = vpop.f32.mrb[11].mxu1  ;;  %2150 = vxpose.xlu0.b32.start.end [1/1] (short) (narrow) %v2020_v36, 8  ;;  %v2915_v38 = vpop.f32.mrb[21].mxu0 }
 0x7b1   : > { %v2023_v39 = vpop.f32.mrb[22].mxu0  ;;  %v2406_v38 = vsub.s32 7, %v3419_v14 }
 0x7b2   : > { %v2916_v42 = vpop.f32.mrb[23].mxu0  ;;  %v3082_v39 = vld [vmem:[#allocation5] sm:$0xff] }
 0x7b3   : > { %v2407_v42 = vrot.slane %v3082_v39, %v2406_v38 }
 0x7b5   : > { %v2066_v43 = vpop.f32.mrb[12].mxu1 }
 0x7b6   : > { %v2921_v44 = vpop.f32.mrb[13].mxu1  ;;  %2182 = vxpose.xlu0.b32.start.end [1/1] (short) (narrow) %v2066_v43, 8 }
 0x7b7   : > { %v2069_v46 = vpop.f32.mrb[14].mxu1  ;;  %v2112_v47 = vpop.f32.mrb[24].mxu0 }
 0x7b8   : > { %v2922_v48 = vpop.f32.mrb[15].mxu1  ;;  %v2927_v49 = vpop.f32.mrb[25].mxu0 }
 0x7b9   : > { %v2115_v50 = vpop.f32.mrb[26].mxu0  ;;  %v3083_v48 = vld [vmem:[%s3400_s25] sm:$0xff] }
 0x7ba   : > { %2214 = vxpose.xlu0.b32.start.end [1/1] (short) (narrow) %v2112_v47, 8  ;;  %v2928_v53 = vpop.f32.mrb[27].mxu0 }
 0x82e   : > { %v2134_v59 = vpop.trf.xlu1 }
 0x830   : > { %v2166_v54 = vpop.trf.xlu0 }
 0x836   : > { %v2198_v56 = vpop.trf.xlu0 }
 0x837   : > { %v2246_v60 = vcombine.low %v2134_v59, %v2198_v56  ;;  %v2247_v61 = vcombine.high %v2134_v59, %v2198_v56 }
 0x839   : > { %v2254_v3 = vrot.slane %v2246_v60, %v3466_v52  ;;  %v2261_v4 = vrot.slane %v2247_v61, %v3466_v52 }
 0x83a   : > { %v2230_v62 = vpop.trf.xlu0 }
 0x83b   : > { %v2262_v63 = vcombine.low %v2166_v54, %v2230_v62  ;;  %v2263_v2 = vcombine.high %v2166_v54, %v2230_v62  ;;  %v3048_v62 = vld [vmem:[#allocation2] sm:$0xff]  }
 0x83c   : > { %2938 = vmatpush3.bf16.msra.mxu0 %v3048_v62 }
 0x83d   : > { %v2270_v5 = vrot.slane %v2262_v63, %v3466_v52  ;;  %v2277_v6 = vrot.slane %v2263_v2, %v3466_v52  ;;  %v3049_v63 = vld [vmem:[#allocation2 + $0x8] sm:$0xff]   ;;  %2939 = vmatprep.subr.bf16.mxu0 %v3218_v8 }
 0x83f   : > { %v2278_v7 = vcombine.low %v2254_v3, %v2270_v5  ;;  %v2279_v9 = vcombine.high %v2254_v3, %v2270_v5  ;;  %v2294_v10 = vcombine.low %v2261_v4, %v2277_v6  ;;  %v2295_v11 = vcombine.high %v2261_v4, %v2277_v6 }
 0x840   : > { %2940 = vmatpush3.bf16.msra.mxu0 %v3049_v63  ;;  %v2479_v5 = vsub.s32 2, %v3419_v14  ;;  %v2484_v6 = vsub.s32 3, %v3419_v14 }
 0x841   : > { %v2286_v13 = vrot.slane %v2278_v7, %v3469_v58  ;;  %v2293_v19 = vrot.slane %v2279_v9, %v3469_v58  ;;  %v2302_v20 = vrot.slane %v2294_v10, %v3469_v58  ;;  %v2309_v21 = vrot.slane %v2295_v11, %v3469_v58 }
 0x842   : > { %v2480_v7 = vrot.slane %v3082_v39, %v2479_v5  ;;  %v2485_v11 = vrot.slane %v3082_v39, %v2484_v6 }
 0x843   : > { %v2314_v22 = vcombine.low %v2286_v13, %v2293_v19  ;;  %v2796_v24 = vcombine.high %v2286_v13, %v2293_v19  ;;  %v2330_v18 = vcombine.low %v2302_v20, %v2309_v21  ;;  %v2797_v16 = vcombine.high %v2302_v20, %v2309_v21  ;;  %v3050_v20 = vld [vmem:[%s3781_s6] sm:$0xff]   ;;  %v3051_v21 = vld [vmem:[%s3781_s6 + $0x8] sm:$0xff]  }
 0x845   : > { %v2321_v26 = vrot.slane %v2314_v22, %v3466_v52  ;;  %v2329_v40 = vrot.slane %v2796_v24, %v3466_v52  ;;  %v2337_v41 = vrot.slane %v2330_v18, %v3466_v52  ;;  %v2345_v27 = vrot.slane %v2797_v16, %v3466_v52  ;;  %v3052_v22 = vld [vmem:[%s3781_s6 + $0x10] sm:$0xff]   ;;  %v3053_v24 = vld [vmem:[%s3781_s6 + $0x18] sm:$0xff]   ;;  %v3054_v18 = vld [vmem:[%s3781_s6 + $0x20] sm:$0xff]  }
 0x846   : > { %v3055_v16 = vld [vmem:[%s3781_s6 + $0x28] sm:$0xff]  }
 0x847   : > { %v2347_v28 = vcombine.high %v2321_v26, %v2329_v40  ;;  %v2363_v30 = vcombine.high %v2337_v41, %v2345_v27  ;;  %v2346_v29 = vcombine.low %v2321_v26, %v2329_v40  ;;  %v2362_v31 = vcombine.low %v2337_v41, %v2345_v27  ;;  %v3057_v26 = vld [vmem:[%s3781_s6 + $0x38] sm:$0xff]  }
 0x848   : > { %v334_v40 = vld [vmem:[#allocation5 + $0x8] sm:$0x3] }
 0x849   : > { %v2361_v32 = vrot.slane %v2347_v28, %v3469_v58  ;;  %v2377_v51 = vrot.slane %v2363_v30, %v3469_v58  ;;  %v2354_v33 = vrot.slane %v2346_v29, %v3469_v58  ;;  %v2370_v34 = vrot.slane %v2362_v31, %v3469_v58 }
 0x84a   : > { %v2495_v41 = vrot.slane %v334_v40, %v357_v17  ;;  %v2579_v17 = vrot.slane %v334_v40, %v352_v15 }
 0x84b   : > { %v2380_v45 = vcombine.low %v2361_v32, %v2377_v51  ;;  %v2379_v55 = vcombine.high %v2354_v33, %v2370_v34  ;;  %v2378_v0 = vcombine.low %v2354_v33, %v2370_v34  ;;  %v2381_v52 = vcombine.high %v2361_v32, %v2377_v51 }
 0x84d   : > { %2387 = vrot.lane.b32.xlu0 %v2380_v45, %s3226_s19  ;;  %2383 = vrot.lane.b32.xlu1 %v2379_v55, %s3227_s29  ;;  %s3146_s19 = scalar_lea.vmem %s3145_s18, 256 }
 0x84e   : > { %p3148_p7 = scmp.lt.s32.totalorder %s3146_s19, %s3140_s12 }
 0x850   : > { %p3149_p8 = por %p3148_p7, %p3147_p4 }
 0x851   : > { %2391 = vrot.lane.b32.xlu1 %v2381_v52, %s3228_s14 }
 0x852   : > { %p3150_p11 = pnand %p3149_p8, %p3143_p3 }
 0x8bf   : > { %v2384_v1 = vpop.permute.xlu1 %2383  ;;  %v2388_v57 = vpop.permute.xlu0 %2387 }
 0x8c0   : > { %v2394_v35 = vsel %vm1282_vm3, %v2378_v0, %v2384_v1 }
 0x8c1   : > { %v2396_v36 = vsel %vm2395_vm4, %v2394_v35, %v2388_v57 }
 0x8c3   : > { %v2392_v23 = vpop.permute.xlu1 %2391 }
 0x8c4   : > { %v2398_v58 = vsel %vm2397_vm5, %v2396_v36, %v2392_v23 }
 0x8c5   : > { %v2399_v37 = vpack.c.bf16 %v2398_v58, %v2398_v58 }
 0x8c7   : > { %2934 = vmatmul.mubr.msk.bf16.vlgmr.msra.gmra.mrb[16].mxu1 %vm335_vm0, %v2399_v37 }
 0x8c8   : > { %2961 = vmatprep.mubr.msk.bf16.mxu1 %vm3219_vm1, %v3218_v8  ;;  %2946 = vmatpush3.bf16.msra.mxu1 %v3050_v20 }
 0x8c9   : > { %2947 = vmatprep.subr.bf16.mxu1 %v3218_v8 }
 0x8cc   : > { %2948 = vmatpush3.bf16.msra.mxu1 %v3051_v21 }
 0x8cd   : > { %2949 = vmatprep.subr.bf16.mxu1 %v3218_v8 }
 0x8d0   : > { %2950 = vmatpush3.bf16.msra.mxu1 %v3052_v22 }
 0x8d1   : > { %2951 = vmatprep.subr.bf16.mxu1 %v3218_v8 }
 0x8d4   : > { %2952 = vmatpush3.bf16.msra.mxu1 %v3053_v24 }
 0x8d5   : > { %2953 = vmatprep.subr.bf16.mxu1 %v3218_v8 }
 0x8d8   : > { %2954 = vmatpush3.bf16.msra.mxu1 %v3054_v18 }
 0x8d9   : > { %2955 = vmatprep.subr.bf16.mxu1 %v3218_v8 }
 0x8dc   : > { %2956 = vmatpush3.bf16.msra.mxu1 %v3055_v16 }
 0x8dd   : > { %2957 = vmatprep.subr.bf16.mxu1 %v3218_v8 }
 0x8e0   : > { %2958 = vmatpush3.bf16.msra.mxu1 %v3056_v25 }
 0x8e1   : > { %2959 = vmatprep.subr.bf16.mxu1 %v3218_v8 }
 0x8e4   : > { %2960 = vmatpush3.bf16.msra.mxu1 %v3057_v26 }
 0x99a   : > { %v2457_v43 = vpop.f32.mrb[16].mxu1 }
 0x99b   : > { %v2458_v44 = vadd.f32 %v2457_v43, %v2407_v42  ;;  %v2935_v46 = vpop.f32.mrb[17].mxu1 }
 0x99c   : > { %v2460_v47 = vpop.f32.mrb[18].mxu1 }
 0x99d   : > { %v3681_v49 = vadd.f32 %v3083_v48, %v2458_v44  ;;  %v2936_v50 = vpop.f32.mrb[19].mxu1 }
 0x99f   : > { %v2464_v53 = vsel %vm335_vm0, %v3681_v49, 0.0 }
 0x9a0   : > { %2465 = vadd.xlane.f32.xlu1 %v2464_v53 }
 0xa2d   : > { %v2466_v54 = vpop.xlane.xlu1 %2465 }
 0xa2e   : > { %v2467_v56 = vmul.f32 0.03125, %v2466_v54 }
 0xa30   : > { %v2468_v59 = vsub.f32 %v3681_v49, %v2467_v56 }
 0xa32   : > { %v2469_v60 = vmul.f32 %v2468_v59, %v2468_v59 }
 0xa34   : > { %v2470_v61 = vsel %vm335_vm0, %v2469_v60, 0.0 }
 0xa35   : > { %2471 = vadd.xlane.f32.xlu0 %v2470_v61 }
 0xac2   : > { %v2472_v2 = vpop.xlane.xlu0 %2471 }
 0xac3   : > { %v2473_v3 = vmul.f32 0.03125, %v2472_v2 }
 0xac5   : > { %v2474_v4 = vadd.f32 1e-05, %v2473_v3 }
 0xac7   : > { %3076 = vrsqrt.f32 %v2474_v4 }
 0xad1   : > { %v3077_v9 = vpop.eup %3076 }
 0xad2   : > { %v2476_v10 = vmul.f32 %v3077_v9, %v2468_v59 }
 0xad4   : > { %v2481_v12 = vmul.f32 %v2480_v7, %v2476_v10 }
 0xad6   : > { %v2486_v13 = vadd.f32 %v2485_v11, %v2481_v12 }
 0xad8   : > { %v2487_v19 = vpack.c.bf16 %v2486_v13, %v2486_v13 }
 0xada   : > { %2942 = vmatmul.mubr.msk.bf16.vlgmr.msra.gmra.mrb[28].mxu0 %vm335_vm0, %v2487_v19 }
 0xbad   : > { %v2545_v27 = vpop.f32.mrb[28].mxu0 }
 0xbae   : > { %v2546_v28 = vadd.f32 %v2545_v27, %v2495_v41  ;;  %v2943_v30 = vpop.f32.mrb[29].mxu0 }
 0xbaf   : > { %v2548_v29 = vpop.f32.mrb[30].mxu0 }
 0xbb0   : > { %v2804_v31 = vmul.f32 -1.702, %v2546_v28  ;;  %v2944_v32 = vpop.f32.mrb[31].mxu0 }
 0xbb2   : > { %v2553_v51 = vmul.f32 1.442695, %v2804_v31 }
 0xbb4   : > { %3078 = vpow2.f32 %v2553_v51 }
 0xbbe   : > { %v3079_v8 = vpop.eup %3078 }
 0xbbf   : > { %v2555_v33 = vadd.f32 1.0, %v3079_v8 }
 0xbc1   : > { %3080 = vrcp.f32 %v2555_v33 }
 0xbcb   : > { %v3081_v34 = vpop.eup %3080 }
 0xbcc   : > { %v2558_v45 = vmul.f32 %v3081_v34, %v2546_v28 }
 0xbce   : > { %v2559_v55 = vpack.c.bf16 %v2558_v45, %v2558_v45 }
 0xbd0   : > { %2962 = vmatmul.mubr.bf16.vlgmr.msra.gmra.mrb[20].mxu1 %v2559_v55 }
 0xca3   : > { %v2662_v0 = vpop.f32.mrb[20].mxu1 }
 0xca4   : > { %v2663_v52 = vadd.f32 %v2662_v0, %v2579_v17  ;;  %v2963_v1 = vpop.f32.mrb[21].mxu1 }
 0xca5   : > { %v2665_v57 = vpop.f32.mrb[22].mxu1 }
 0xca6   : > { %v2668_v35 = vadd.f32 %v2663_v52, %v3681_v49  ;;  %v2964_v23 = vpop.f32.mrb[23].mxu1 }
 0xca8   : > { %2669 = vst.msk [vmem:[%s326_s22] sm:$0xff] %vm335_vm0, %v2668_v35 }
 0xca9   : > { %3153 = shalt.err (!%p3150_p11)
}
 0xcaa   : > { %s3154_s29 = scalar_lea.hbm %s3732_s10, 128  ;;  %s3158_s21 = scalar_lea.hbm %s3783_s8, 256 }
 0xcab   : > { %p3155_p13 = scmp.ne.s32.totalorder %s3732_s10, %s3154_s29  ;;  %p3159_p6 = scmp.lt.u32.totalorder %s3732_s10, %s3783_s8 }
 0xcac   : > { %p3160_p9 = scmp.lt.u32.totalorder %s3158_s21, %s3154_s29  ;;  %p3162_p12 = scmp.lt.u32.totalorder %s3154_s29, %s3732_s10 }
 0xcad   : > { %p3156_p0 = pnand %p3155_p13, %p3799_p1 }
 0xcae   : > { %p3161_p10 = por %p3160_p9, %p3159_p6 }
 0xcaf   : > { %p3157_p5 = pneg %p3156_p0 }
 0xcb0   : > { %p3163_p2 = por %p3162_p12, %p3161_p10 }
 0xcb2   : > { %p3164_p3 = pnand %p3163_p2, %p3157_p5 }
 0xcb4   : > { %3167 = shalt.err (!%p3164_p3)
}
 0xcb5   : > { %2973 = dma.vmem_to_hbm [thread:$0]  (%p3799_p1), %s3734_s24, 128, %s3732_s10, %s2671_s9  }
 0xcb6 PF: > { %p2990_p4 = scmp.ge.s32.totalorder %s3210_s30, 2  ;;  %s2696_s22 = sand.u32 1, %s3198_s27  }
 0xcb7   : > { %p3800_p7 = scmp.ne.s32.totalorder %s3791_s16, 0  ;;  %s2697_s17 = scalar_lea.sflag [#allocation4], %s2696_s22 }
 0xcb9   : > { %p2983_p8 = pnand %p2990_p4, %p3800_p7 }
 0xcbb   : > { %3193 = dma.done.wait (!%p2983_p8), %s2697_s17, 128  }
 0xcbc   : > { %3195 = vsyncadd (!%p2983_p8), %s2697_s17, 4294967168  ;;  %s3801_s26 = sld [smem:[#allocation11_spill]]  ;;  %s3802_s29 = sld [smem:[#allocation12_spill]] }
 0xcbd   : > { %p20_p11 = scmp.ge.s32.totalorder %s3300_s11, 4   ;;  %s3803_s27 = smov %s3202_s28 }
 0xcbe   : > { %s3805_s30 = smov %s3300_s11 }
 0xcbf   :  { %22 = sbr.rel (!%p20_p11) target bundleno = 5 (0x5), region = 96 }
 0xcc2   : > { %s3804_s28 = smov %s3801_s26 }
 0xcc6   :  { %2702 = vsyncpa [#allocation3], 1 }
 0xcc7   :  { %2704 = vsyncpa [#allocation3 + $0x1], 1 }
 0xcc8   :  { %2705 = vsyncpa [#allocation6], 1 }
 0xcc9   :  { %2706 = vsyncpa [#allocation4], 1 }
 0xcca   :  { %2708 = vsyncpa [#allocation4 + $0x1], 1 }

</bundles_post_ra>
